<compile_context>
chip_gen: v7x
topology: tpu7x:2x2x1
jax: 0.10.0
libtpu: 0.0.40
codegen_flags: <defaults>
</compile_context>

<pallas_src>
import functools

import jax
import jax.numpy as jnp
from jax.experimental import pallas as pl
from jax.experimental.pallas import tpu as pltpu


# ---------------------------------------------------------------------------
# Fused Pallas kernel: all layers + time loop + classifier
# ---------------------------------------------------------------------------
def fused_lstm_kernel(lens_ref, x_ref, *refs,
                      num_layers, seq_len, batch, hidden, num_classes, out_lanes):
    """Whole forward pass in a single kernel invocation.

    Ref layout after (lens_ref, x_ref):
      [W_ih^T_0, W_hh^T_0, bias_0, ..., W_ih^T_{L-1}, W_hh^T_{L-1}, bias_{L-1},
       W_cls^T, b_cls,            # remaining inputs
       out_ref,                   # packed output: [feats | preds | 0-pad] (B, 128)
       proj_scr]                  # VMEM scratch: hoisted input projections
    Gate column blocks are ordered [i | f | o | g].
    """
    L, T, B, H, C = num_layers, seq_len, batch, hidden, num_classes
    w_refs = refs[:3 * L]
    wcls_ref, bcls_ref = refs[3 * L], refs[3 * L + 1]
    out_ref = refs[3 * L + 2]
    proj_scr = refs[3 * L + 3]

    lens = lens_ref[...]                          # (B, 1) int32, loaded once
    # Hoisted validity masks: computed once, reused by every layer.
    masks = [t < lens for t in range(T)]          # list of (B, 1) bool

    src = x_ref[...]                              # (T*B, Din) layer-0 input
    h_last = None
    for l in range(L):                            # layers unrolled at trace time
        wih = w_refs[3 * l][...]                  # (Din_l, 4H)
        whh = w_refs[3 * l + 1][...]              # (H, 4H)
        b = w_refs[3 * l + 2][...]                # (1, 4H)

        # Hoisted input projection + bias for all timesteps: one MXU pass.
        proj_scr[...] = jnp.dot(src, wih,
                                preferred_element_type=jnp.float32) + b  # (T*B, 4H)

        write_seq = l < L - 1                     # last layer's sequence never leaves regs
        h = jnp.zeros((B, H), jnp.float32)
        c = jnp.zeros((B, H), jnp.float32)
        h_list = []

        # T is small and static -> fully unrolled; all slice starts are static and
        # 8-sublane aligned (B is padded to a multiple of 8 in the wrapper).
        for t in range(T):
            gates = (proj_scr[pl.ds(t * B, B), :]                    # (B, 4H), 1 tile
                     + jnp.dot(h, whh, preferred_element_type=jnp.float32))

            # Gate order [i | f | o | g]: sigmoid on the first 3H lanes only,
            # tanh on the last H lanes only (~half the EUP work of sig+tanh on 4H).
            sig = jax.nn.sigmoid(gates[:, :3 * H])
            g_g = jnp.tanh(gates[:, 3 * H:])
            i_g = sig[:, 0 * H:1 * H]
            f_g = sig[:, 1 * H:2 * H]
            o_g = sig[:, 2 * H:3 * H]

            c_new = f_g * c + i_g * g_g
            h_new = o_g * jnp.tanh(c_new)

            # Freeze state for padded positions (t >= seq_len[b]) -> packed semantics.
            valid = masks[t]                      # (B, 1) bool, broadcasts over H
            h = jnp.where(valid, h_new, h)
            c = jnp.where(valid, c_new, c)

            if write_seq:
                h_list.append(h)                  # kept in registers, no per-step store

        if write_seq:
            # One contiguous value feeds the next layer (no per-step partial stores).
            src = jnp.concatenate(h_list, axis=0)            # (T*B, H)
        h_last = h

    # Classifier head fused into the same kernel.
    logits = (jnp.dot(h_last, wcls_ref[...], preferred_element_type=jnp.float32)
              + bcls_ref[...])
    preds = jax.nn.sigmoid(logits)

    # Pack [feats | preds | zero-pad] into one lane-dense (B, out_lanes) store.
    pad_w = out_lanes - H - C
    pieces = [h_last, preds]
    if pad_w > 0:
        pieces.append(jnp.zeros((B, pad_w), jnp.float32))
    out_ref[...] = jnp.concatenate(pieces, axis=1)


# ---------------------------------------------------------------------------
# Wrapper
# ---------------------------------------------------------------------------
@jax.jit
def lstm_forward(params, x, seq_lengths):
    """x: (B, T, input_dim) batch-first, seq_lengths: (B,) int.
    Returns (preds (B, num_classes), feats (B, hidden))."""
    B, T, Din = x.shape
    H = params["lstm"][0][1].shape[0]             # W_hh^T is (H, 4H)
    C = params["cls_w"].shape[1]
    L = len(params["lstm"])

    # Pad batch (sublane dim) to a multiple of 8; pad rows get seq_len = 0 so their
    # state stays frozen at zero and they are sliced off the outputs below.
    B_pad = max(8, ((B + 7) // 8) * 8)
    OUT_LANES = ((H + C + 127) // 128) * 128      # lane-dense packed output width

    x_f = x.astype(jnp.float32)
    lens_full = seq_lengths.astype(jnp.int32)
    if B_pad != B:
        x_f = jnp.pad(x_f, ((0, B_pad - B), (0, 0), (0, 0)))
        lens_full = jnp.pad(lens_full, (0, B_pad - B))

    # time-major, flattened: row t*B_pad + b holds x[b, t, :]
    x_tm = jnp.transpose(x_f, (1, 0, 2)).reshape(T * B_pad, Din)
    lens = lens_full.reshape(B_pad, 1)

    args = [lens, x_tm]
    in_specs = [pl.BlockSpec((B_pad, 1), lambda i: (0, 0)),
                pl.BlockSpec((T * B_pad, Din), lambda i: (0, 0))]
    for (wih_t, whh_t, bias) in params["lstm"]:
        args += [wih_t, whh_t, bias]
        in_specs += [pl.BlockSpec(wih_t.shape, lambda i: (0, 0)),
                     pl.BlockSpec(whh_t.shape, lambda i: (0, 0)),
                     pl.BlockSpec(bias.shape, lambda i: (0, 0))]
    args += [params["cls_w"], params["cls_b"]]
    in_specs += [pl.BlockSpec(params["cls_w"].shape, lambda i: (0, 0)),
                 pl.BlockSpec(params["cls_b"].shape, lambda i: (0, 0))]

    kernel = functools.partial(fused_lstm_kernel, num_layers=L, seq_len=T,
                               batch=B_pad, hidden=H, num_classes=C,
                               out_lanes=OUT_LANES)

    out = pl.pallas_call(
        kernel,
        out_shape=jax.ShapeDtypeStruct((B_pad, OUT_LANES), jnp.float32),
        grid_spec=pltpu.PrefetchScalarGridSpec(
            num_scalar_prefetch=0,
            grid=(1,),
            in_specs=in_specs,
            out_specs=pl.BlockSpec((B_pad, OUT_LANES), lambda i: (0, 0)),
            scratch_shapes=[pltpu.VMEM((T * B_pad, 4 * H), jnp.float32)]),
        compiler_params=pltpu.CompilerParams(
            dimension_semantics=("arbitrary",)),
    )(*args)

    feats = out[:B, :H]
    preds = out[:B, H:H + C]
    return preds, feats


# ---------------------------------------------------------------------------
# Parameter init (deterministic; mirrors the module's initialize_weights).
# Stored transposed: W_ih^T (Din, 4H), W_hh^T (H, 4H), bias (1, 4H), with gate
# column blocks ordered [i | f | o | g].  (Weights imported from torch — order
# i,f,g,o — would need a one-time column permutation.)
# ---------------------------------------------------------------------------
def init_params(key, input_dim, hidden, num_layers, num_classes):
    params = {"lstm": []}
    d_in = input_dim
    for _ in range(num_layers):
        key, k1, k2 = jax.random.split(key, 3)
        # xavier_uniform for W_ih (torch shape (4H, d_in)) -> stored transposed
        bound = (6.0 / (d_in + 4 * hidden)) ** 0.5
        w_ih = jax.random.uniform(k1, (4 * hidden, d_in), jnp.float32, -bound, bound)
        # orthogonal for W_hh (torch shape (4H, H)) -> stored transposed
        w_hh = jax.nn.initializers.orthogonal()(k2, (4 * hidden, hidden), jnp.float32)
        bias = jnp.zeros((1, 4 * hidden), jnp.float32)  # b_ih + b_hh, both zero
        params["lstm"].append((w_ih.T, w_hh.T, bias))
        d_in = hidden
    key, k3 = jax.random.split(key)
    bound = (6.0 / (hidden + num_classes)) ** 0.5
    w_cls = jax.random.uniform(k3, (num_classes, hidden), jnp.float32, -bound, bound)
    params["cls_w"] = w_cls.T                      # (H, C)
    params["cls_b"] = jnp.zeros((1, num_classes), jnp.float32)
    return params


# ---------------------------------------------------------------------------
# Pure-JAX reference (same [i|f|o|g] gate layout) for a sanity check
# ---------------------------------------------------------------------------
def lstm_forward_ref(params, x, seq_lengths):
    B, T, _ = x.shape
    x_tm = jnp.transpose(x, (1, 0, 2)).astype(jnp.float32)
    t_idx = jnp.arange(T, dtype=jnp.int32)[:, None]
    mask = (t_idx < seq_lengths[None, :]).astype(jnp.float32)[:, :, None]

    h_last = None
    for (w_ih_t, w_hh_t, bias) in params["lstm"]:
        H = w_hh_t.shape[0]
        h = jnp.zeros((B, H), jnp.float32)
        c = jnp.zeros((B, H), jnp.float32)

        def step(carry, inp):
            h, c = carry
            x_t, m = inp
            gates = x_t @ w_ih_t + h @ w_hh_t + bias
            i = jax.nn.sigmoid(gates[:, 0 * H:1 * H])
            f = jax.nn.sigmoid(gates[:, 1 * H:2 * H])
            o = jax.nn.sigmoid(gates[:, 2 * H:3 * H])
            g = jnp.tanh(gates[:, 3 * H:4 * H])
            c_new = f * c + i * g
            h_new = o * jnp.tanh(c_new)
            h = m * h_new + (1.0 - m) * h
            c = m * c_new + (1.0 - m) * c
            return (h, c), h

        (h, c), hseq = jax.lax.scan(step, (h, c), (x_tm, mask))
        x_tm, h_last = hseq, h

    feats = h_last
    preds = jax.nn.sigmoid(feats @ params["cls_w"] + params["cls_b"])
    return preds, feats


if __name__ == "__main__":
    # args: layers=2, dim=32, num_classes=5, dropout=0.0 ; input_dim=16
    LAYERS, HIDDEN, NUM_CLASSES, INPUT_DIM = 2, 32, 5, 16
    B, T = 2, 8

    key = jax.random.PRNGKey(0)
    key, kx = jax.random.split(key)
    x = jax.random.normal(kx, (B, T, INPUT_DIM), jnp.float32)
    seq_lengths = jnp.array([8, 5], dtype=jnp.int32)

    params = init_params(key, INPUT_DIM, HIDDEN, LAYERS, NUM_CLASSES)

    preds, feats = lstm_forward(params, x, seq_lengths)
    jax.block_until_ready((preds, feats))

    preds_ref, feats_ref = lstm_forward_ref(params, x, seq_lengths)
    assert preds.shape == (B, NUM_CLASSES) and feats.shape == (B, HIDDEN)
    assert jnp.allclose(preds, preds_ref, atol=1e-4, rtol=1e-4)
    assert jnp.allclose(feats, feats_ref, atol=1e-4, rtol=1e-4)

    print("KERNEL_OK")
</pallas_src>

<mosaic_0001>
module attributes {stable_mosaic.version = 11 : i64} {
  func.func @fused_lstm_kernel(%arg0: i32, %arg1: memref<8x1xi32, #tpu.memory_space<vmem>>, %arg2: memref<64x16xf32, #tpu.memory_space<vmem>>, %arg3: memref<16x128xf32, #tpu.memory_space<vmem>>, %arg4: memref<32x128xf32, #tpu.memory_space<vmem>>, %arg5: memref<1x128xf32, #tpu.memory_space<vmem>>, %arg6: memref<32x128xf32, #tpu.memory_space<vmem>>, %arg7: memref<32x128xf32, #tpu.memory_space<vmem>>, %arg8: memref<1x128xf32, #tpu.memory_space<vmem>>, %arg9: memref<32x5xf32, #tpu.memory_space<vmem>>, %arg10: memref<1x5xf32, #tpu.memory_space<vmem>>, %arg11: memref<8x128xf32, #tpu.memory_space<vmem>>, %arg12: memref<64x128xf32, #tpu.memory_space<vmem>>) attributes {dimension_semantics = [#tpu.dimension_semantics<arbitrary>], iteration_bounds = array<i64: 1>, scalar_prefetch = 0 : i64, scratch_operands = 1 : i64, tpu.core_type = #tpu.core_type<tc>, window_params = [{pipeline_mode = #tpu.pipeline_mode<synchronous>, transform_indices = @transform_0, window_bounds = array<i64: 8, 1>}, {pipeline_mode = #tpu.pipeline_mode<synchronous>, transform_indices = @transform_1, window_bounds = array<i64: 64, 16>}, {pipeline_mode = #tpu.pipeline_mode<synchronous>, transform_indices = @transform_2, window_bounds = array<i64: 16, 128>}, {pipeline_mode = #tpu.pipeline_mode<synchronous>, transform_indices = @transform_3, window_bounds = array<i64: 32, 128>}, {pipeline_mode = #tpu.pipeline_mode<synchronous>, transform_indices = @transform_4, window_bounds = array<i64: 1, 128>}, {pipeline_mode = #tpu.pipeline_mode<synchronous>, transform_indices = @transform_5, window_bounds = array<i64: 32, 128>}, {pipeline_mode = #tpu.pipeline_mode<synchronous>, transform_indices = @transform_6, window_bounds = array<i64: 32, 128>}, {pipeline_mode = #tpu.pipeline_mode<synchronous>, transform_indices = @transform_7, window_bounds = array<i64: 1, 128>}, {pipeline_mode = #tpu.pipeline_mode<synchronous>, transform_indices = @transform_8, window_bounds = array<i64: 32, 5>}, {pipeline_mode = #tpu.pipeline_mode<synchronous>, transform_indices = @transform_9, window_bounds = array<i64: 1, 5>}, {pipeline_mode = #tpu.pipeline_mode<synchronous>, transform_indices = @transform_10, window_bounds = array<i64: 8, 128>}]} {
    %c0 = arith.constant 0 : index
    %c0_0 = arith.constant 0 : index
    %0 = vector.load %arg1[%c0, %c0_0] : memref<8x1xi32, #tpu.memory_space<vmem>>, vector<8x1xi32>
    %c0_i32 = arith.constant 0 : i32
    %1 = vector.broadcast %c0_i32 : i32 to vector<8x1xi32>
    %2 = arith.cmpi sgt, %0, %1 : vector<8x1xi32>
    %c1_i32 = arith.constant 1 : i32
    %3 = vector.broadcast %c1_i32 : i32 to vector<8x1xi32>
    %4 = arith.cmpi sgt, %0, %3 : vector<8x1xi32>
    %c2_i32 = arith.constant 2 : i32
    %5 = vector.broadcast %c2_i32 : i32 to vector<8x1xi32>
    %6 = arith.cmpi sgt, %0, %5 : vector<8x1xi32>
    %c3_i32 = arith.constant 3 : i32
    %7 = vector.broadcast %c3_i32 : i32 to vector<8x1xi32>
    %8 = arith.cmpi sgt, %0, %7 : vector<8x1xi32>
    %c4_i32 = arith.constant 4 : i32
    %9 = vector.broadcast %c4_i32 : i32 to vector<8x1xi32>
    %10 = arith.cmpi sgt, %0, %9 : vector<8x1xi32>
    %c5_i32 = arith.constant 5 : i32
    %11 = vector.broadcast %c5_i32 : i32 to vector<8x1xi32>
    %12 = arith.cmpi sgt, %0, %11 : vector<8x1xi32>
    %c6_i32 = arith.constant 6 : i32
    %13 = vector.broadcast %c6_i32 : i32 to vector<8x1xi32>
    %14 = arith.cmpi sgt, %0, %13 : vector<8x1xi32>
    %c7_i32 = arith.constant 7 : i32
    %15 = vector.broadcast %c7_i32 : i32 to vector<8x1xi32>
    %16 = arith.cmpi sgt, %0, %15 : vector<8x1xi32>
    %c0_1 = arith.constant 0 : index
    %c0_2 = arith.constant 0 : index
    %17 = vector.load %arg2[%c0_1, %c0_2] : memref<64x16xf32, #tpu.memory_space<vmem>>, vector<64x16xf32>
    %c0_3 = arith.constant 0 : index
    %c0_4 = arith.constant 0 : index
    %18 = vector.load %arg3[%c0_3, %c0_4] : memref<16x128xf32, #tpu.memory_space<vmem>>, vector<16x128xf32>
    %c0_5 = arith.constant 0 : index
    %c0_6 = arith.constant 0 : index
    %19 = vector.load %arg4[%c0_5, %c0_6] : memref<32x128xf32, #tpu.memory_space<vmem>>, vector<32x128xf32>
    %c0_7 = arith.constant 0 : index
    %c0_8 = arith.constant 0 : index
    %20 = vector.load %arg5[%c0_7, %c0_8] : memref<1x128xf32, #tpu.memory_space<vmem>>, vector<1x128xf32>
    %cst = arith.constant dense<0.000000e+00> : vector<64x128xf32>
    %21 = tpu.matmul %17, %18, %cst {dimension_numbers = #tpu.dot_dimension_numbers<[1], [0], [0], [1], [0, 0, 1, 1], [], []>} : vector<64x16xf32>, vector<16x128xf32>, vector<64x128xf32> -> vector<64x128xf32>
    %22 = vector.broadcast %20 : vector<1x128xf32> to vector<64x128xf32>
    %23 = arith.addf %21, %22 : vector<64x128xf32>
    %c0_9 = arith.constant 0 : index
    %c0_10 = arith.constant 0 : index
    %24 = vector.load %arg12[%c0_9, %c0_10] : memref<64x128xf32, #tpu.memory_space<vmem>>, vector<64x128xf32>
    tpu.vector_store %arg12[%c0_9, %c0_10], %23 {strides = array<i32>} : memref<64x128xf32, #tpu.memory_space<vmem>>, vector<64x128xf32>,
    %cst_11 = arith.constant 0.000000e+00 : f32
    %25 = vector.broadcast %cst_11 : f32 to vector<8x32xf32>
    %cst_12 = arith.constant 0.000000e+00 : f32
    %26 = vector.broadcast %cst_12 : f32 to vector<8x32xf32>
    %c0_13 = arith.constant 0 : index
    %c0_14 = arith.constant 0 : index
    %27 = vector.load %arg12[%c0_13, %c0_14] : memref<64x128xf32, #tpu.memory_space<vmem>>, vector<8x128xf32>
    %cst_15 = arith.constant dense<0.000000e+00> : vector<8x128xf32>
    %28 = tpu.matmul %25, %19, %cst_15 {dimension_numbers = #tpu.dot_dimension_numbers<[1], [0], [0], [1], [0, 0, 1, 1], [], []>} : vector<8x32xf32>, vector<32x128xf32>, vector<8x128xf32> -> vector<8x128xf32>
    %29 = arith.addf %27, %28 : vector<8x128xf32>
    %30 = vector.extract_strided_slice %29 {offsets = [0, 0], sizes = [8, 96], strides = [1, 1]} : vector<8x128xf32> to vector<8x96xf32>
    %31 = arith.negf %30 : vector<8x96xf32>
    %32 = math.exp %31 : vector<8x96xf32>
    %cst_16 = arith.constant 1.000000e+00 : f32
    %33 = vector.broadcast %cst_16 : f32 to vector<8x96xf32>
    %34 = arith.addf %33, %32 : vector<8x96xf32>
    %35 = arith.divf %33, %34 : vector<8x96xf32>
    %36 = vector.extract_strided_slice %29 {offsets = [0, 96], sizes = [8, 32], strides = [1, 1]} : vector<8x128xf32> to vector<8x32xf32>
    %37 = math.tanh %36 : vector<8x32xf32>
    %38 = vector.extract_strided_slice %35 {offsets = [0, 0], sizes = [8, 32], strides = [1, 1]} : vector<8x96xf32> to vector<8x32xf32>
    %39 = vector.extract_strided_slice %35 {offsets = [0, 32], sizes = [8, 32], strides = [1, 1]} : vector<8x96xf32> to vector<8x32xf32>
    %40 = vector.extract_strided_slice %35 {offsets = [0, 64], sizes = [8, 32], strides = [1, 1]} : vector<8x96xf32> to vector<8x32xf32>
    %41 = arith.mulf %39, %26 : vector<8x32xf32>
    %42 = arith.mulf %38, %37 : vector<8x32xf32>
    %43 = arith.addf %41, %42 : vector<8x32xf32>
    %44 = math.tanh %43 : vector<8x32xf32>
    %45 = arith.mulf %40, %44 : vector<8x32xf32>
    %46 = vector.shape_cast %2 : vector<8x1xi1> to vector<8x1xi1>
    %47 = vector.broadcast %46 : vector<8x1xi1> to vector<8x32xi1>
    %48 = arith.select %47, %45, %25 : vector<8x32xi1>, vector<8x32xf32>
    %49 = vector.shape_cast %2 : vector<8x1xi1> to vector<8x1xi1>
    %50 = vector.broadcast %49 : vector<8x1xi1> to vector<8x32xi1>
    %51 = arith.select %50, %43, %26 : vector<8x32xi1>, vector<8x32xf32>
    %c8 = arith.constant 8 : index
    %c0_17 = arith.constant 0 : index
    %52 = vector.load %arg12[%c8, %c0_17] : memref<64x128xf32, #tpu.memory_space<vmem>>, vector<8x128xf32>
    %cst_18 = arith.constant dense<0.000000e+00> : vector<8x128xf32>
    %53 = tpu.matmul %48, %19, %cst_18 {dimension_numbers = #tpu.dot_dimension_numbers<[1], [0], [0], [1], [0, 0, 1, 1], [], []>} : vector<8x32xf32>, vector<32x128xf32>, vector<8x128xf32> -> vector<8x128xf32>
    %54 = arith.addf %52, %53 : vector<8x128xf32>
    %55 = vector.extract_strided_slice %54 {offsets = [0, 0], sizes = [8, 96], strides = [1, 1]} : vector<8x128xf32> to vector<8x96xf32>
    %56 = arith.negf %55 : vector<8x96xf32>
    %57 = math.exp %56 : vector<8x96xf32>
    %cst_19 = arith.constant 1.000000e+00 : f32
    %58 = vector.broadcast %cst_19 : f32 to vector<8x96xf32>
    %59 = arith.addf %58, %57 : vector<8x96xf32>
    %60 = arith.divf %58, %59 : vector<8x96xf32>
    %61 = vector.extract_strided_slice %54 {offsets = [0, 96], sizes = [8, 32], strides = [1, 1]} : vector<8x128xf32> to vector<8x32xf32>
    %62 = math.tanh %61 : vector<8x32xf32>
    %63 = vector.extract_strided_slice %60 {offsets = [0, 0], sizes = [8, 32], strides = [1, 1]} : vector<8x96xf32> to vector<8x32xf32>
    %64 = vector.extract_strided_slice %60 {offsets = [0, 32], sizes = [8, 32], strides = [1, 1]} : vector<8x96xf32> to vector<8x32xf32>
    %65 = vector.extract_strided_slice %60 {offsets = [0, 64], sizes = [8, 32], strides = [1, 1]} : vector<8x96xf32> to vector<8x32xf32>
    %66 = arith.mulf %64, %51 : vector<8x32xf32>
    %67 = arith.mulf %63, %62 : vector<8x32xf32>
    %68 = arith.addf %66, %67 : vector<8x32xf32>
    %69 = math.tanh %68 : vector<8x32xf32>
    %70 = arith.mulf %65, %69 : vector<8x32xf32>
    %71 = vector.shape_cast %4 : vector<8x1xi1> to vector<8x1xi1>
    %72 = vector.broadcast %71 : vector<8x1xi1> to vector<8x32xi1>
    %73 = arith.select %72, %70, %48 : vector<8x32xi1>, vector<8x32xf32>
    %74 = vector.shape_cast %4 : vector<8x1xi1> to vector<8x1xi1>
    %75 = vector.broadcast %74 : vector<8x1xi1> to vector<8x32xi1>
    %76 = arith.select %75, %68, %51 : vector<8x32xi1>, vector<8x32xf32>
    %c16 = arith.constant 16 : index
    %c0_20 = arith.constant 0 : index
    %77 = vector.load %arg12[%c16, %c0_20] : memref<64x128xf32, #tpu.memory_space<vmem>>, vector<8x128xf32>
    %cst_21 = arith.constant dense<0.000000e+00> : vector<8x128xf32>
    %78 = tpu.matmul %73, %19, %cst_21 {dimension_numbers = #tpu.dot_dimension_numbers<[1], [0], [0], [1], [0, 0, 1, 1], [], []>} : vector<8x32xf32>, vector<32x128xf32>, vector<8x128xf32> -> vector<8x128xf32>
    %79 = arith.addf %77, %78 : vector<8x128xf32>
    %80 = vector.extract_strided_slice %79 {offsets = [0, 0], sizes = [8, 96], strides = [1, 1]} : vector<8x128xf32> to vector<8x96xf32>
    %81 = arith.negf %80 : vector<8x96xf32>
    %82 = math.exp %81 : vector<8x96xf32>
    %cst_22 = arith.constant 1.000000e+00 : f32
    %83 = vector.broadcast %cst_22 : f32 to vector<8x96xf32>
    %84 = arith.addf %83, %82 : vector<8x96xf32>
    %85 = arith.divf %83, %84 : vector<8x96xf32>
    %86 = vector.extract_strided_slice %79 {offsets = [0, 96], sizes = [8, 32], strides = [1, 1]} : vector<8x128xf32> to vector<8x32xf32>
    %87 = math.tanh %86 : vector<8x32xf32>
    %88 = vector.extract_strided_slice %85 {offsets = [0, 0], sizes = [8, 32], strides = [1, 1]} : vector<8x96xf32> to vector<8x32xf32>
    %89 = vector.extract_strided_slice %85 {offsets = [0, 32], sizes = [8, 32], strides = [1, 1]} : vector<8x96xf32> to vector<8x32xf32>
    %90 = vector.extract_strided_slice %85 {offsets = [0, 64], sizes = [8, 32], strides = [1, 1]} : vector<8x96xf32> to vector<8x32xf32>
    %91 = arith.mulf %89, %76 : vector<8x32xf32>
    %92 = arith.mulf %88, %87 : vector<8x32xf32>
    %93 = arith.addf %91, %92 : vector<8x32xf32>
    %94 = math.tanh %93 : vector<8x32xf32>
    %95 = arith.mulf %90, %94 : vector<8x32xf32>
    %96 = vector.shape_cast %6 : vector<8x1xi1> to vector<8x1xi1>
    %97 = vector.broadcast %96 : vector<8x1xi1> to vector<8x32xi1>
    %98 = arith.select %97, %95, %73 : vector<8x32xi1>, vector<8x32xf32>
    %99 = vector.shape_cast %6 : vector<8x1xi1> to vector<8x1xi1>
    %100 = vector.broadcast %99 : vector<8x1xi1> to vector<8x32xi1>
    %101 = arith.select %100, %93, %76 : vector<8x32xi1>, vector<8x32xf32>
    %c24 = arith.constant 24 : index
    %c0_23 = arith.constant 0 : index
    %102 = vector.load %arg12[%c24, %c0_23] : memref<64x128xf32, #tpu.memory_space<vmem>>, vector<8x128xf32>
    %cst_24 = arith.constant dense<0.000000e+00> : vector<8x128xf32>
    %103 = tpu.matmul %98, %19, %cst_24 {dimension_numbers = #tpu.dot_dimension_numbers<[1], [0], [0], [1], [0, 0, 1, 1], [], []>} : vector<8x32xf32>, vector<32x128xf32>, vector<8x128xf32> -> vector<8x128xf32>
    %104 = arith.addf %102, %103 : vector<8x128xf32>
    %105 = vector.extract_strided_slice %104 {offsets = [0, 0], sizes = [8, 96], strides = [1, 1]} : vector<8x128xf32> to vector<8x96xf32>
    %106 = arith.negf %105 : vector<8x96xf32>
    %107 = math.exp %106 : vector<8x96xf32>
    %cst_25 = arith.constant 1.000000e+00 : f32
    %108 = vector.broadcast %cst_25 : f32 to vector<8x96xf32>
    %109 = arith.addf %108, %107 : vector<8x96xf32>
    %110 = arith.divf %108, %109 : vector<8x96xf32>
    %111 = vector.extract_strided_slice %104 {offsets = [0, 96], sizes = [8, 32], strides = [1, 1]} : vector<8x128xf32> to vector<8x32xf32>
    %112 = math.tanh %111 : vector<8x32xf32>
    %113 = vector.extract_strided_slice %110 {offsets = [0, 0], sizes = [8, 32], strides = [1, 1]} : vector<8x96xf32> to vector<8x32xf32>
    %114 = vector.extract_strided_slice %110 {offsets = [0, 32], sizes = [8, 32], strides = [1, 1]} : vector<8x96xf32> to vector<8x32xf32>
    %115 = vector.extract_strided_slice %110 {offsets = [0, 64], sizes = [8, 32], strides = [1, 1]} : vector<8x96xf32> to vector<8x32xf32>
    %116 = arith.mulf %114, %101 : vector<8x32xf32>
    %117 = arith.mulf %113, %112 : vector<8x32xf32>
    %118 = arith.addf %116, %117 : vector<8x32xf32>
    %119 = math.tanh %118 : vector<8x32xf32>
    %120 = arith.mulf %115, %119 : vector<8x32xf32>
    %121 = vector.shape_cast %8 : vector<8x1xi1> to vector<8x1xi1>
    %122 = vector.broadcast %121 : vector<8x1xi1> to vector<8x32xi1>
    %123 = arith.select %122, %120, %98 : vector<8x32xi1>, vector<8x32xf32>
    %124 = vector.shape_cast %8 : vector<8x1xi1> to vector<8x1xi1>
    %125 = vector.broadcast %124 : vector<8x1xi1> to vector<8x32xi1>
    %126 = arith.select %125, %118, %101 : vector<8x32xi1>, vector<8x32xf32>
    %c32 = arith.constant 32 : index
    %c0_26 = arith.constant 0 : index
    %127 = vector.load %arg12[%c32, %c0_26] : memref<64x128xf32, #tpu.memory_space<vmem>>, vector<8x128xf32>
    %cst_27 = arith.constant dense<0.000000e+00> : vector<8x128xf32>
    %128 = tpu.matmul %123, %19, %cst_27 {dimension_numbers = #tpu.dot_dimension_numbers<[1], [0], [0], [1], [0, 0, 1, 1], [], []>} : vector<8x32xf32>, vector<32x128xf32>, vector<8x128xf32> -> vector<8x128xf32>
    %129 = arith.addf %127, %128 : vector<8x128xf32>
    %130 = vector.extract_strided_slice %129 {offsets = [0, 0], sizes = [8, 96], strides = [1, 1]} : vector<8x128xf32> to vector<8x96xf32>
    %131 = arith.negf %130 : vector<8x96xf32>
    %132 = math.exp %131 : vector<8x96xf32>
    %cst_28 = arith.constant 1.000000e+00 : f32
    %133 = vector.broadcast %cst_28 : f32 to vector<8x96xf32>
    %134 = arith.addf %133, %132 : vector<8x96xf32>
    %135 = arith.divf %133, %134 : vector<8x96xf32>
    %136 = vector.extract_strided_slice %129 {offsets = [0, 96], sizes = [8, 32], strides = [1, 1]} : vector<8x128xf32> to vector<8x32xf32>
    %137 = math.tanh %136 : vector<8x32xf32>
    %138 = vector.extract_strided_slice %135 {offsets = [0, 0], sizes = [8, 32], strides = [1, 1]} : vector<8x96xf32> to vector<8x32xf32>
    %139 = vector.extract_strided_slice %135 {offsets = [0, 32], sizes = [8, 32], strides = [1, 1]} : vector<8x96xf32> to vector<8x32xf32>
    %140 = vector.extract_strided_slice %135 {offsets = [0, 64], sizes = [8, 32], strides = [1, 1]} : vector<8x96xf32> to vector<8x32xf32>
    %141 = arith.mulf %139, %126 : vector<8x32xf32>
    %142 = arith.mulf %138, %137 : vector<8x32xf32>
    %143 = arith.addf %141, %142 : vector<8x32xf32>
    %144 = math.tanh %143 : vector<8x32xf32>
    %145 = arith.mulf %140, %144 : vector<8x32xf32>
    %146 = vector.shape_cast %10 : vector<8x1xi1> to vector<8x1xi1>
    %147 = vector.broadcast %146 : vector<8x1xi1> to vector<8x32xi1>
    %148 = arith.select %147, %145, %123 : vector<8x32xi1>, vector<8x32xf32>
    %149 = vector.shape_cast %10 : vector<8x1xi1> to vector<8x1xi1>
    %150 = vector.broadcast %149 : vector<8x1xi1> to vector<8x32xi1>
    %151 = arith.select %150, %143, %126 : vector<8x32xi1>, vector<8x32xf32>
    %c40 = arith.constant 40 : index
    %c0_29 = arith.constant 0 : index
    %152 = vector.load %arg12[%c40, %c0_29] : memref<64x128xf32, #tpu.memory_space<vmem>>, vector<8x128xf32>
    %cst_30 = arith.constant dense<0.000000e+00> : vector<8x128xf32>
    %153 = tpu.matmul %148, %19, %cst_30 {dimension_numbers = #tpu.dot_dimension_numbers<[1], [0], [0], [1], [0, 0, 1, 1], [], []>} : vector<8x32xf32>, vector<32x128xf32>, vector<8x128xf32> -> vector<8x128xf32>
    %154 = arith.addf %152, %153 : vector<8x128xf32>
    %155 = vector.extract_strided_slice %154 {offsets = [0, 0], sizes = [8, 96], strides = [1, 1]} : vector<8x128xf32> to vector<8x96xf32>
    %156 = arith.negf %155 : vector<8x96xf32>
    %157 = math.exp %156 : vector<8x96xf32>
    %cst_31 = arith.constant 1.000000e+00 : f32
    %158 = vector.broadcast %cst_31 : f32 to vector<8x96xf32>
    %159 = arith.addf %158, %157 : vector<8x96xf32>
    %160 = arith.divf %158, %159 : vector<8x96xf32>
    %161 = vector.extract_strided_slice %154 {offsets = [0, 96], sizes = [8, 32], strides = [1, 1]} : vector<8x128xf32> to vector<8x32xf32>
    %162 = math.tanh %161 : vector<8x32xf32>
    %163 = vector.extract_strided_slice %160 {offsets = [0, 0], sizes = [8, 32], strides = [1, 1]} : vector<8x96xf32> to vector<8x32xf32>
    %164 = vector.extract_strided_slice %160 {offsets = [0, 32], sizes = [8, 32], strides = [1, 1]} : vector<8x96xf32> to vector<8x32xf32>
    %165 = vector.extract_strided_slice %160 {offsets = [0, 64], sizes = [8, 32], strides = [1, 1]} : vector<8x96xf32> to vector<8x32xf32>
    %166 = arith.mulf %164, %151 : vector<8x32xf32>
    %167 = arith.mulf %163, %162 : vector<8x32xf32>
    %168 = arith.addf %166, %167 : vector<8x32xf32>
    %169 = math.tanh %168 : vector<8x32xf32>
    %170 = arith.mulf %165, %169 : vector<8x32xf32>
    %171 = vector.shape_cast %12 : vector<8x1xi1> to vector<8x1xi1>
    %172 = vector.broadcast %171 : vector<8x1xi1> to vector<8x32xi1>
    %173 = arith.select %172, %170, %148 : vector<8x32xi1>, vector<8x32xf32>
    %174 = vector.shape_cast %12 : vector<8x1xi1> to vector<8x1xi1>
    %175 = vector.broadcast %174 : vector<8x1xi1> to vector<8x32xi1>
    %176 = arith.select %175, %168, %151 : vector<8x32xi1>, vector<8x32xf32>
    %c48 = arith.constant 48 : index
    %c0_32 = arith.constant 0 : index
    %177 = vector.load %arg12[%c48, %c0_32] : memref<64x128xf32, #tpu.memory_space<vmem>>, vector<8x128xf32>
    %cst_33 = arith.constant dense<0.000000e+00> : vector<8x128xf32>
    %178 = tpu.matmul %173, %19, %cst_33 {dimension_numbers = #tpu.dot_dimension_numbers<[1], [0], [0], [1], [0, 0, 1, 1], [], []>} : vector<8x32xf32>, vector<32x128xf32>, vector<8x128xf32> -> vector<8x128xf32>
    %179 = arith.addf %177, %178 : vector<8x128xf32>
    %180 = vector.extract_strided_slice %179 {offsets = [0, 0], sizes = [8, 96], strides = [1, 1]} : vector<8x128xf32> to vector<8x96xf32>
    %181 = arith.negf %180 : vector<8x96xf32>
    %182 = math.exp %181 : vector<8x96xf32>
    %cst_34 = arith.constant 1.000000e+00 : f32
    %183 = vector.broadcast %cst_34 : f32 to vector<8x96xf32>
    %184 = arith.addf %183, %182 : vector<8x96xf32>
    %185 = arith.divf %183, %184 : vector<8x96xf32>
    %186 = vector.extract_strided_slice %179 {offsets = [0, 96], sizes = [8, 32], strides = [1, 1]} : vector<8x128xf32> to vector<8x32xf32>
    %187 = math.tanh %186 : vector<8x32xf32>
    %188 = vector.extract_strided_slice %185 {offsets = [0, 0], sizes = [8, 32], strides = [1, 1]} : vector<8x96xf32> to vector<8x32xf32>
    %189 = vector.extract_strided_slice %185 {offsets = [0, 32], sizes = [8, 32], strides = [1, 1]} : vector<8x96xf32> to vector<8x32xf32>
    %190 = vector.extract_strided_slice %185 {offsets = [0, 64], sizes = [8, 32], strides = [1, 1]} : vector<8x96xf32> to vector<8x32xf32>
    %191 = arith.mulf %189, %176 : vector<8x32xf32>
    %192 = arith.mulf %188, %187 : vector<8x32xf32>
    %193 = arith.addf %191, %192 : vector<8x32xf32>
    %194 = math.tanh %193 : vector<8x32xf32>
    %195 = arith.mulf %190, %194 : vector<8x32xf32>
    %196 = vector.shape_cast %14 : vector<8x1xi1> to vector<8x1xi1>
    %197 = vector.broadcast %196 : vector<8x1xi1> to vector<8x32xi1>
    %198 = arith.select %197, %195, %173 : vector<8x32xi1>, vector<8x32xf32>
    %199 = vector.shape_cast %14 : vector<8x1xi1> to vector<8x1xi1>
    %200 = vector.broadcast %199 : vector<8x1xi1> to vector<8x32xi1>
    %201 = arith.select %200, %193, %176 : vector<8x32xi1>, vector<8x32xf32>
    %c56 = arith.constant 56 : index
    %c0_35 = arith.constant 0 : index
    %202 = vector.load %arg12[%c56, %c0_35] : memref<64x128xf32, #tpu.memory_space<vmem>>, vector<8x128xf32>
    %cst_36 = arith.constant dense<0.000000e+00> : vector<8x128xf32>
    %203 = tpu.matmul %198, %19, %cst_36 {dimension_numbers = #tpu.dot_dimension_numbers<[1], [0], [0], [1], [0, 0, 1, 1], [], []>} : vector<8x32xf32>, vector<32x128xf32>, vector<8x128xf32> -> vector<8x128xf32>
    %204 = arith.addf %202, %203 : vector<8x128xf32>
    %205 = vector.extract_strided_slice %204 {offsets = [0, 0], sizes = [8, 96], strides = [1, 1]} : vector<8x128xf32> to vector<8x96xf32>
    %206 = arith.negf %205 : vector<8x96xf32>
    %207 = math.exp %206 : vector<8x96xf32>
    %cst_37 = arith.constant 1.000000e+00 : f32
    %208 = vector.broadcast %cst_37 : f32 to vector<8x96xf32>
    %209 = arith.addf %208, %207 : vector<8x96xf32>
    %210 = arith.divf %208, %209 : vector<8x96xf32>
    %211 = vector.extract_strided_slice %204 {offsets = [0, 96], sizes = [8, 32], strides = [1, 1]} : vector<8x128xf32> to vector<8x32xf32>
    %212 = math.tanh %211 : vector<8x32xf32>
    %213 = vector.extract_strided_slice %210 {offsets = [0, 0], sizes = [8, 32], strides = [1, 1]} : vector<8x96xf32> to vector<8x32xf32>
    %214 = vector.extract_strided_slice %210 {offsets = [0, 32], sizes = [8, 32], strides = [1, 1]} : vector<8x96xf32> to vector<8x32xf32>
    %215 = vector.extract_strided_slice %210 {offsets = [0, 64], sizes = [8, 32], strides = [1, 1]} : vector<8x96xf32> to vector<8x32xf32>
    %216 = arith.mulf %214, %201 : vector<8x32xf32>
    %217 = arith.mulf %213, %212 : vector<8x32xf32>
    %218 = arith.addf %216, %217 : vector<8x32xf32>
    %219 = math.tanh %218 : vector<8x32xf32>
    %220 = arith.mulf %215, %219 : vector<8x32xf32>
    %221 = vector.shape_cast %16 : vector<8x1xi1> to vector<8x1xi1>
    %222 = vector.broadcast %221 : vector<8x1xi1> to vector<8x32xi1>
    %223 = arith.select %222, %220, %198 : vector<8x32xi1>, vector<8x32xf32>
    %224 = tpu.concatenate %48, %73, %98, %123, %148, %173, %198, %223 in 0 : vector<8x32xf32>, vector<8x32xf32>, vector<8x32xf32>, vector<8x32xf32>, vector<8x32xf32>, vector<8x32xf32>, vector<8x32xf32>, vector<8x32xf32> -> vector<64x32xf32>
    %c0_38 = arith.constant 0 : index
    %c0_39 = arith.constant 0 : index
    %225 = vector.load %arg6[%c0_38, %c0_39] : memref<32x128xf32, #tpu.memory_space<vmem>>, vector<32x128xf32>
    %c0_40 = arith.constant 0 : index
    %c0_41 = arith.constant 0 : index
    %226 = vector.load %arg7[%c0_40, %c0_41] : memref<32x128xf32, #tpu.memory_space<vmem>>, vector<32x128xf32>
    %c0_42 = arith.constant 0 : index
    %c0_43 = arith.constant 0 : index
    %227 = vector.load %arg8[%c0_42, %c0_43] : memref<1x128xf32, #tpu.memory_space<vmem>>, vector<1x128xf32>
    %cst_44 = arith.constant dense<0.000000e+00> : vector<64x128xf32>
    %228 = tpu.matmul %224, %225, %cst_44 {dimension_numbers = #tpu.dot_dimension_numbers<[1], [0], [0], [1], [0, 0, 1, 1], [], []>} : vector<64x32xf32>, vector<32x128xf32>, vector<64x128xf32> -> vector<64x128xf32>
    %229 = vector.broadcast %227 : vector<1x128xf32> to vector<64x128xf32>
    %230 = arith.addf %228, %229 : vector<64x128xf32>
    %c0_45 = arith.constant 0 : index
    %c0_46 = arith.constant 0 : index
    %231 = vector.load %arg12[%c0_45, %c0_46] : memref<64x128xf32, #tpu.memory_space<vmem>>, vector<64x128xf32>
    tpu.vector_store %arg12[%c0_45, %c0_46], %230 {strides = array<i32>} : memref<64x128xf32, #tpu.memory_space<vmem>>, vector<64x128xf32>,
    %cst_47 = arith.constant 0.000000e+00 : f32
    %232 = vector.broadcast %cst_47 : f32 to vector<8x32xf32>
    %cst_48 = arith.constant 0.000000e+00 : f32
    %233 = vector.broadcast %cst_48 : f32 to vector<8x32xf32>
    %c0_49 = arith.constant 0 : index
    %c0_50 = arith.constant 0 : index
    %234 = vector.load %arg12[%c0_49, %c0_50] : memref<64x128xf32, #tpu.memory_space<vmem>>, vector<8x128xf32>
    %cst_51 = arith.constant dense<0.000000e+00> : vector<8x128xf32>
    %235 = tpu.matmul %232, %226, %cst_51 {dimension_numbers = #tpu.dot_dimension_numbers<[1], [0], [0], [1], [0, 0, 1, 1], [], []>} : vector<8x32xf32>, vector<32x128xf32>, vector<8x128xf32> -> vector<8x128xf32>
    %236 = arith.addf %234, %235 : vector<8x128xf32>
    %237 = vector.extract_strided_slice %236 {offsets = [0, 0], sizes = [8, 96], strides = [1, 1]} : vector<8x128xf32> to vector<8x96xf32>
    %238 = arith.negf %237 : vector<8x96xf32>
    %239 = math.exp %238 : vector<8x96xf32>
    %cst_52 = arith.constant 1.000000e+00 : f32
    %240 = vector.broadcast %cst_52 : f32 to vector<8x96xf32>
    %241 = arith.addf %240, %239 : vector<8x96xf32>
    %242 = arith.divf %240, %241 : vector<8x96xf32>
    %243 = vector.extract_strided_slice %236 {offsets = [0, 96], sizes = [8, 32], strides = [1, 1]} : vector<8x128xf32> to vector<8x32xf32>
    %244 = math.tanh %243 : vector<8x32xf32>
    %245 = vector.extract_strided_slice %242 {offsets = [0, 0], sizes = [8, 32], strides = [1, 1]} : vector<8x96xf32> to vector<8x32xf32>
    %246 = vector.extract_strided_slice %242 {offsets = [0, 32], sizes = [8, 32], strides = [1, 1]} : vector<8x96xf32> to vector<8x32xf32>
    %247 = vector.extract_strided_slice %242 {offsets = [0, 64], sizes = [8, 32], strides = [1, 1]} : vector<8x96xf32> to vector<8x32xf32>
    %248 = arith.mulf %246, %233 : vector<8x32xf32>
    %249 = arith.mulf %245, %244 : vector<8x32xf32>
    %250 = arith.addf %248, %249 : vector<8x32xf32>
    %251 = math.tanh %250 : vector<8x32xf32>
    %252 = arith.mulf %247, %251 : vector<8x32xf32>
    %253 = vector.shape_cast %2 : vector<8x1xi1> to vector<8x1xi1>
    %254 = vector.broadcast %253 : vector<8x1xi1> to vector<8x32xi1>
    %255 = arith.select %254, %252, %232 : vector<8x32xi1>, vector<8x32xf32>
    %256 = vector.shape_cast %2 : vector<8x1xi1> to vector<8x1xi1>
    %257 = vector.broadcast %256 : vector<8x1xi1> to vector<8x32xi1>
    %258 = arith.select %257, %250, %233 : vector<8x32xi1>, vector<8x32xf32>
    %c8_53 = arith.constant 8 : index
    %c0_54 = arith.constant 0 : index
    %259 = vector.load %arg12[%c8_53, %c0_54] : memref<64x128xf32, #tpu.memory_space<vmem>>, vector<8x128xf32>
    %cst_55 = arith.constant dense<0.000000e+00> : vector<8x128xf32>
    %260 = tpu.matmul %255, %226, %cst_55 {dimension_numbers = #tpu.dot_dimension_numbers<[1], [0], [0], [1], [0, 0, 1, 1], [], []>} : vector<8x32xf32>, vector<32x128xf32>, vector<8x128xf32> -> vector<8x128xf32>
    %261 = arith.addf %259, %260 : vector<8x128xf32>
    %262 = vector.extract_strided_slice %261 {offsets = [0, 0], sizes = [8, 96], strides = [1, 1]} : vector<8x128xf32> to vector<8x96xf32>
    %263 = arith.negf %262 : vector<8x96xf32>
    %264 = math.exp %263 : vector<8x96xf32>
    %cst_56 = arith.constant 1.000000e+00 : f32
    %265 = vector.broadcast %cst_56 : f32 to vector<8x96xf32>
    %266 = arith.addf %265, %264 : vector<8x96xf32>
    %267 = arith.divf %265, %266 : vector<8x96xf32>
    %268 = vector.extract_strided_slice %261 {offsets = [0, 96], sizes = [8, 32], strides = [1, 1]} : vector<8x128xf32> to vector<8x32xf32>
    %269 = math.tanh %268 : vector<8x32xf32>
    %270 = vector.extract_strided_slice %267 {offsets = [0, 0], sizes = [8, 32], strides = [1, 1]} : vector<8x96xf32> to vector<8x32xf32>
    %271 = vector.extract_strided_slice %267 {offsets = [0, 32], sizes = [8, 32], strides = [1, 1]} : vector<8x96xf32> to vector<8x32xf32>
    %272 = vector.extract_strided_slice %267 {offsets = [0, 64], sizes = [8, 32], strides = [1, 1]} : vector<8x96xf32> to vector<8x32xf32>
    %273 = arith.mulf %271, %258 : vector<8x32xf32>
    %274 = arith.mulf %270, %269 : vector<8x32xf32>
    %275 = arith.addf %273, %274 : vector<8x32xf32>
    %276 = math.tanh %275 : vector<8x32xf32>
    %277 = arith.mulf %272, %276 : vector<8x32xf32>
    %278 = vector.shape_cast %4 : vector<8x1xi1> to vector<8x1xi1>
    %279 = vector.broadcast %278 : vector<8x1xi1> to vector<8x32xi1>
    %280 = arith.select %279, %277, %255 : vector<8x32xi1>, vector<8x32xf32>
    %281 = vector.shape_cast %4 : vector<8x1xi1> to vector<8x1xi1>
    %282 = vector.broadcast %281 : vector<8x1xi1> to vector<8x32xi1>
    %283 = arith.select %282, %275, %258 : vector<8x32xi1>, vector<8x32xf32>
    %c16_57 = arith.constant 16 : index
    %c0_58 = arith.constant 0 : index
    %284 = vector.load %arg12[%c16_57, %c0_58] : memref<64x128xf32, #tpu.memory_space<vmem>>, vector<8x128xf32>
    %cst_59 = arith.constant dense<0.000000e+00> : vector<8x128xf32>
    %285 = tpu.matmul %280, %226, %cst_59 {dimension_numbers = #tpu.dot_dimension_numbers<[1], [0], [0], [1], [0, 0, 1, 1], [], []>} : vector<8x32xf32>, vector<32x128xf32>, vector<8x128xf32> -> vector<8x128xf32>
    %286 = arith.addf %284, %285 : vector<8x128xf32>
    %287 = vector.extract_strided_slice %286 {offsets = [0, 0], sizes = [8, 96], strides = [1, 1]} : vector<8x128xf32> to vector<8x96xf32>
    %288 = arith.negf %287 : vector<8x96xf32>
    %289 = math.exp %288 : vector<8x96xf32>
    %cst_60 = arith.constant 1.000000e+00 : f32
    %290 = vector.broadcast %cst_60 : f32 to vector<8x96xf32>
    %291 = arith.addf %290, %289 : vector<8x96xf32>
    %292 = arith.divf %290, %291 : vector<8x96xf32>
    %293 = vector.extract_strided_slice %286 {offsets = [0, 96], sizes = [8, 32], strides = [1, 1]} : vector<8x128xf32> to vector<8x32xf32>
    %294 = math.tanh %293 : vector<8x32xf32>
    %295 = vector.extract_strided_slice %292 {offsets = [0, 0], sizes = [8, 32], strides = [1, 1]} : vector<8x96xf32> to vector<8x32xf32>
    %296 = vector.extract_strided_slice %292 {offsets = [0, 32], sizes = [8, 32], strides = [1, 1]} : vector<8x96xf32> to vector<8x32xf32>
    %297 = vector.extract_strided_slice %292 {offsets = [0, 64], sizes = [8, 32], strides = [1, 1]} : vector<8x96xf32> to vector<8x32xf32>
    %298 = arith.mulf %296, %283 : vector<8x32xf32>
    %299 = arith.mulf %295, %294 : vector<8x32xf32>
    %300 = arith.addf %298, %299 : vector<8x32xf32>
    %301 = math.tanh %300 : vector<8x32xf32>
    %302 = arith.mulf %297, %301 : vector<8x32xf32>
    %303 = vector.shape_cast %6 : vector<8x1xi1> to vector<8x1xi1>
    %304 = vector.broadcast %303 : vector<8x1xi1> to vector<8x32xi1>
    %305 = arith.select %304, %302, %280 : vector<8x32xi1>, vector<8x32xf32>
    %306 = vector.shape_cast %6 : vector<8x1xi1> to vector<8x1xi1>
    %307 = vector.broadcast %306 : vector<8x1xi1> to vector<8x32xi1>
    %308 = arith.select %307, %300, %283 : vector<8x32xi1>, vector<8x32xf32>
    %c24_61 = arith.constant 24 : index
    %c0_62 = arith.constant 0 : index
    %309 = vector.load %arg12[%c24_61, %c0_62] : memref<64x128xf32, #tpu.memory_space<vmem>>, vector<8x128xf32>
    %cst_63 = arith.constant dense<0.000000e+00> : vector<8x128xf32>
    %310 = tpu.matmul %305, %226, %cst_63 {dimension_numbers = #tpu.dot_dimension_numbers<[1], [0], [0], [1], [0, 0, 1, 1], [], []>} : vector<8x32xf32>, vector<32x128xf32>, vector<8x128xf32> -> vector<8x128xf32>
    %311 = arith.addf %309, %310 : vector<8x128xf32>
    %312 = vector.extract_strided_slice %311 {offsets = [0, 0], sizes = [8, 96], strides = [1, 1]} : vector<8x128xf32> to vector<8x96xf32>
    %313 = arith.negf %312 : vector<8x96xf32>
    %314 = math.exp %313 : vector<8x96xf32>
    %cst_64 = arith.constant 1.000000e+00 : f32
    %315 = vector.broadcast %cst_64 : f32 to vector<8x96xf32>
    %316 = arith.addf %315, %314 : vector<8x96xf32>
    %317 = arith.divf %315, %316 : vector<8x96xf32>
    %318 = vector.extract_strided_slice %311 {offsets = [0, 96], sizes = [8, 32], strides = [1, 1]} : vector<8x128xf32> to vector<8x32xf32>
    %319 = math.tanh %318 : vector<8x32xf32>
    %320 = vector.extract_strided_slice %317 {offsets = [0, 0], sizes = [8, 32], strides = [1, 1]} : vector<8x96xf32> to vector<8x32xf32>
    %321 = vector.extract_strided_slice %317 {offsets = [0, 32], sizes = [8, 32], strides = [1, 1]} : vector<8x96xf32> to vector<8x32xf32>
    %322 = vector.extract_strided_slice %317 {offsets = [0, 64], sizes = [8, 32], strides = [1, 1]} : vector<8x96xf32> to vector<8x32xf32>
    %323 = arith.mulf %321, %308 : vector<8x32xf32>
    %324 = arith.mulf %320, %319 : vector<8x32xf32>
    %325 = arith.addf %323, %324 : vector<8x32xf32>
    %326 = math.tanh %325 : vector<8x32xf32>
    %327 = arith.mulf %322, %326 : vector<8x32xf32>
    %328 = vector.shape_cast %8 : vector<8x1xi1> to vector<8x1xi1>
    %329 = vector.broadcast %328 : vector<8x1xi1> to vector<8x32xi1>
    %330 = arith.select %329, %327, %305 : vector<8x32xi1>, vector<8x32xf32>
    %331 = vector.shape_cast %8 : vector<8x1xi1> to vector<8x1xi1>
    %332 = vector.broadcast %331 : vector<8x1xi1> to vector<8x32xi1>
    %333 = arith.select %332, %325, %308 : vector<8x32xi1>, vector<8x32xf32>
    %c32_65 = arith.constant 32 : index
    %c0_66 = arith.constant 0 : index
    %334 = vector.load %arg12[%c32_65, %c0_66] : memref<64x128xf32, #tpu.memory_space<vmem>>, vector<8x128xf32>
    %cst_67 = arith.constant dense<0.000000e+00> : vector<8x128xf32>
    %335 = tpu.matmul %330, %226, %cst_67 {dimension_numbers = #tpu.dot_dimension_numbers<[1], [0], [0], [1], [0, 0, 1, 1], [], []>} : vector<8x32xf32>, vector<32x128xf32>, vector<8x128xf32> -> vector<8x128xf32>
    %336 = arith.addf %334, %335 : vector<8x128xf32>
    %337 = vector.extract_strided_slice %336 {offsets = [0, 0], sizes = [8, 96], strides = [1, 1]} : vector<8x128xf32> to vector<8x96xf32>
    %338 = arith.negf %337 : vector<8x96xf32>
    %339 = math.exp %338 : vector<8x96xf32>
    %cst_68 = arith.constant 1.000000e+00 : f32
    %340 = vector.broadcast %cst_68 : f32 to vector<8x96xf32>
    %341 = arith.addf %340, %339 : vector<8x96xf32>
    %342 = arith.divf %340, %341 : vector<8x96xf32>
    %343 = vector.extract_strided_slice %336 {offsets = [0, 96], sizes = [8, 32], strides = [1, 1]} : vector<8x128xf32> to vector<8x32xf32>
    %344 = math.tanh %343 : vector<8x32xf32>
    %345 = vector.extract_strided_slice %342 {offsets = [0, 0], sizes = [8, 32], strides = [1, 1]} : vector<8x96xf32> to vector<8x32xf32>
    %346 = vector.extract_strided_slice %342 {offsets = [0, 32], sizes = [8, 32], strides = [1, 1]} : vector<8x96xf32> to vector<8x32xf32>
    %347 = vector.extract_strided_slice %342 {offsets = [0, 64], sizes = [8, 32], strides = [1, 1]} : vector<8x96xf32> to vector<8x32xf32>
    %348 = arith.mulf %346, %333 : vector<8x32xf32>
    %349 = arith.mulf %345, %344 : vector<8x32xf32>
    %350 = arith.addf %348, %349 : vector<8x32xf32>
    %351 = math.tanh %350 : vector<8x32xf32>
    %352 = arith.mulf %347, %351 : vector<8x32xf32>
    %353 = vector.shape_cast %10 : vector<8x1xi1> to vector<8x1xi1>
    %354 = vector.broadcast %353 : vector<8x1xi1> to vector<8x32xi1>
    %355 = arith.select %354, %352, %330 : vector<8x32xi1>, vector<8x32xf32>
    %356 = vector.shape_cast %10 : vector<8x1xi1> to vector<8x1xi1>
    %357 = vector.broadcast %356 : vector<8x1xi1> to vector<8x32xi1>
    %358 = arith.select %357, %350, %333 : vector<8x32xi1>, vector<8x32xf32>
    %c40_69 = arith.constant 40 : index
    %c0_70 = arith.constant 0 : index
    %359 = vector.load %arg12[%c40_69, %c0_70] : memref<64x128xf32, #tpu.memory_space<vmem>>, vector<8x128xf32>
    %cst_71 = arith.constant dense<0.000000e+00> : vector<8x128xf32>
    %360 = tpu.matmul %355, %226, %cst_71 {dimension_numbers = #tpu.dot_dimension_numbers<[1], [0], [0], [1], [0, 0, 1, 1], [], []>} : vector<8x32xf32>, vector<32x128xf32>, vector<8x128xf32> -> vector<8x128xf32>
    %361 = arith.addf %359, %360 : vector<8x128xf32>
    %362 = vector.extract_strided_slice %361 {offsets = [0, 0], sizes = [8, 96], strides = [1, 1]} : vector<8x128xf32> to vector<8x96xf32>
    %363 = arith.negf %362 : vector<8x96xf32>
    %364 = math.exp %363 : vector<8x96xf32>
    %cst_72 = arith.constant 1.000000e+00 : f32
    %365 = vector.broadcast %cst_72 : f32 to vector<8x96xf32>
    %366 = arith.addf %365, %364 : vector<8x96xf32>
    %367 = arith.divf %365, %366 : vector<8x96xf32>
    %368 = vector.extract_strided_slice %361 {offsets = [0, 96], sizes = [8, 32], strides = [1, 1]} : vector<8x128xf32> to vector<8x32xf32>
    %369 = math.tanh %368 : vector<8x32xf32>
    %370 = vector.extract_strided_slice %367 {offsets = [0, 0], sizes = [8, 32], strides = [1, 1]} : vector<8x96xf32> to vector<8x32xf32>
    %371 = vector.extract_strided_slice %367 {offsets = [0, 32], sizes = [8, 32], strides = [1, 1]} : vector<8x96xf32> to vector<8x32xf32>
    %372 = vector.extract_strided_slice %367 {offsets = [0, 64], sizes = [8, 32], strides = [1, 1]} : vector<8x96xf32> to vector<8x32xf32>
    %373 = arith.mulf %371, %358 : vector<8x32xf32>
    %374 = arith.mulf %370, %369 : vector<8x32xf32>
    %375 = arith.addf %373, %374 : vector<8x32xf32>
    %376 = math.tanh %375 : vector<8x32xf32>
    %377 = arith.mulf %372, %376 : vector<8x32xf32>
    %378 = vector.shape_cast %12 : vector<8x1xi1> to vector<8x1xi1>
    %379 = vector.broadcast %378 : vector<8x1xi1> to vector<8x32xi1>
    %380 = arith.select %379, %377, %355 : vector<8x32xi1>, vector<8x32xf32>
    %381 = vector.shape_cast %12 : vector<8x1xi1> to vector<8x1xi1>
    %382 = vector.broadcast %381 : vector<8x1xi1> to vector<8x32xi1>
    %383 = arith.select %382, %375, %358 : vector<8x32xi1>, vector<8x32xf32>
    %c48_73 = arith.constant 48 : index
    %c0_74 = arith.constant 0 : index
    %384 = vector.load %arg12[%c48_73, %c0_74] : memref<64x128xf32, #tpu.memory_space<vmem>>, vector<8x128xf32>
    %cst_75 = arith.constant dense<0.000000e+00> : vector<8x128xf32>
    %385 = tpu.matmul %380, %226, %cst_75 {dimension_numbers = #tpu.dot_dimension_numbers<[1], [0], [0], [1], [0, 0, 1, 1], [], []>} : vector<8x32xf32>, vector<32x128xf32>, vector<8x128xf32> -> vector<8x128xf32>
    %386 = arith.addf %384, %385 : vector<8x128xf32>
    %387 = vector.extract_strided_slice %386 {offsets = [0, 0], sizes = [8, 96], strides = [1, 1]} : vector<8x128xf32> to vector<8x96xf32>
    %388 = arith.negf %387 : vector<8x96xf32>
    %389 = math.exp %388 : vector<8x96xf32>
    %cst_76 = arith.constant 1.000000e+00 : f32
    %390 = vector.broadcast %cst_76 : f32 to vector<8x96xf32>
    %391 = arith.addf %390, %389 : vector<8x96xf32>
    %392 = arith.divf %390, %391 : vector<8x96xf32>
    %393 = vector.extract_strided_slice %386 {offsets = [0, 96], sizes = [8, 32], strides = [1, 1]} : vector<8x128xf32> to vector<8x32xf32>
    %394 = math.tanh %393 : vector<8x32xf32>
    %395 = vector.extract_strided_slice %392 {offsets = [0, 0], sizes = [8, 32], strides = [1, 1]} : vector<8x96xf32> to vector<8x32xf32>
    %396 = vector.extract_strided_slice %392 {offsets = [0, 32], sizes = [8, 32], strides = [1, 1]} : vector<8x96xf32> to vector<8x32xf32>
    %397 = vector.extract_strided_slice %392 {offsets = [0, 64], sizes = [8, 32], strides = [1, 1]} : vector<8x96xf32> to vector<8x32xf32>
    %398 = arith.mulf %396, %383 : vector<8x32xf32>
    %399 = arith.mulf %395, %394 : vector<8x32xf32>
    %400 = arith.addf %398, %399 : vector<8x32xf32>
    %401 = math.tanh %400 : vector<8x32xf32>
    %402 = arith.mulf %397, %401 : vector<8x32xf32>
    %403 = vector.shape_cast %14 : vector<8x1xi1> to vector<8x1xi1>
    %404 = vector.broadcast %403 : vector<8x1xi1> to vector<8x32xi1>
    %405 = arith.select %404, %402, %380 : vector<8x32xi1>, vector<8x32xf32>
    %406 = vector.shape_cast %14 : vector<8x1xi1> to vector<8x1xi1>
    %407 = vector.broadcast %406 : vector<8x1xi1> to vector<8x32xi1>
    %408 = arith.select %407, %400, %383 : vector<8x32xi1>, vector<8x32xf32>
    %c56_77 = arith.constant 56 : index
    %c0_78 = arith.constant 0 : index
    %409 = vector.load %arg12[%c56_77, %c0_78] : memref<64x128xf32, #tpu.memory_space<vmem>>, vector<8x128xf32>
    %cst_79 = arith.constant dense<0.000000e+00> : vector<8x128xf32>
    %410 = tpu.matmul %405, %226, %cst_79 {dimension_numbers = #tpu.dot_dimension_numbers<[1], [0], [0], [1], [0, 0, 1, 1], [], []>} : vector<8x32xf32>, vector<32x128xf32>, vector<8x128xf32> -> vector<8x128xf32>
    %411 = arith.addf %409, %410 : vector<8x128xf32>
    %412 = vector.extract_strided_slice %411 {offsets = [0, 0], sizes = [8, 96], strides = [1, 1]} : vector<8x128xf32> to vector<8x96xf32>
    %413 = arith.negf %412 : vector<8x96xf32>
    %414 = math.exp %413 : vector<8x96xf32>
    %cst_80 = arith.constant 1.000000e+00 : f32
    %415 = vector.broadcast %cst_80 : f32 to vector<8x96xf32>
    %416 = arith.addf %415, %414 : vector<8x96xf32>
    %417 = arith.divf %415, %416 : vector<8x96xf32>
    %418 = vector.extract_strided_slice %411 {offsets = [0, 96], sizes = [8, 32], strides = [1, 1]} : vector<8x128xf32> to vector<8x32xf32>
    %419 = math.tanh %418 : vector<8x32xf32>
    %420 = vector.extract_strided_slice %417 {offsets = [0, 0], sizes = [8, 32], strides = [1, 1]} : vector<8x96xf32> to vector<8x32xf32>
    %421 = vector.extract_strided_slice %417 {offsets = [0, 32], sizes = [8, 32], strides = [1, 1]} : vector<8x96xf32> to vector<8x32xf32>
    %422 = vector.extract_strided_slice %417 {offsets = [0, 64], sizes = [8, 32], strides = [1, 1]} : vector<8x96xf32> to vector<8x32xf32>
    %423 = arith.mulf %421, %408 : vector<8x32xf32>
    %424 = arith.mulf %420, %419 : vector<8x32xf32>
    %425 = arith.addf %423, %424 : vector<8x32xf32>
    %426 = math.tanh %425 : vector<8x32xf32>
    %427 = arith.mulf %422, %426 : vector<8x32xf32>
    %428 = vector.shape_cast %16 : vector<8x1xi1> to vector<8x1xi1>
    %429 = vector.broadcast %428 : vector<8x1xi1> to vector<8x32xi1>
    %430 = arith.select %429, %427, %405 : vector<8x32xi1>, vector<8x32xf32>
    %c0_81 = arith.constant 0 : index
    %c0_82 = arith.constant 0 : index
    %431 = vector.load %arg9[%c0_81, %c0_82] : memref<32x5xf32, #tpu.memory_space<vmem>>, vector<32x5xf32>
    %cst_83 = arith.constant dense<0.000000e+00> : vector<8x5xf32>
    %432 = tpu.matmul %430, %431, %cst_83 {dimension_numbers = #tpu.dot_dimension_numbers<[1], [0], [0], [1], [0, 0, 1, 1], [], []>} : vector<8x32xf32>, vector<32x5xf32>, vector<8x5xf32> -> vector<8x5xf32>
    %c0_84 = arith.constant 0 : index
    %c0_85 = arith.constant 0 : index
    %433 = vector.load %arg10[%c0_84, %c0_85] : memref<1x5xf32, #tpu.memory_space<vmem>>, vector<1x5xf32>
    %434 = vector.broadcast %433 : vector<1x5xf32> to vector<8x5xf32>
    %435 = arith.addf %432, %434 : vector<8x5xf32>
    %436 = arith.negf %435 : vector<8x5xf32>
    %437 = math.exp %436 : vector<8x5xf32>
    %cst_86 = arith.constant 1.000000e+00 : f32
    %438 = vector.broadcast %cst_86 : f32 to vector<8x5xf32>
    %439 = arith.addf %438, %437 : vector<8x5xf32>
    %440 = arith.divf %438, %439 : vector<8x5xf32>
    %cst_87 = arith.constant 0.000000e+00 : f32
    %441 = vector.broadcast %cst_87 : f32 to vector<8x91xf32>
    %442 = tpu.concatenate %430, %440, %441 in 1 : vector<8x32xf32>, vector<8x5xf32>, vector<8x91xf32> -> vector<8x128xf32>
    %c0_88 = arith.constant 0 : index
    %c0_89 = arith.constant 0 : index
    %443 = vector.load %arg11[%c0_88, %c0_89] : memref<8x128xf32, #tpu.memory_space<vmem>>, vector<8x128xf32>
    tpu.vector_store %arg11[%c0_88, %c0_89], %442 {strides = array<i32>} : memref<8x128xf32, #tpu.memory_space<vmem>>, vector<8x128xf32>,
    return
  }
  func.func @transform_0(%arg0: i32) -> (i32, i32) {
    %c0_i32 = arith.constant 0 : i32
    %c0_i32_0 = arith.constant 0 : i32
    %c0_i32_1 = arith.constant 0 : i32
    return %c0_i32, %c0_i32_0 : i32, i32
  }
  func.func @transform_1(%arg0: i32) -> (i32, i32) {
    %c0_i32 = arith.constant 0 : i32
    %c0_i32_0 = arith.constant 0 : i32
    %c0_i32_1 = arith.constant 0 : i32
    return %c0_i32, %c0_i32_0 : i32, i32
  }
  func.func @transform_2(%arg0: i32) -> (i32, i32) {
    %c0_i32 = arith.constant 0 : i32
    %c0_i32_0 = arith.constant 0 : i32
    %c0_i32_1 = arith.constant 0 : i32
    return %c0_i32, %c0_i32_0 : i32, i32
  }
  func.func @transform_3(%arg0: i32) -> (i32, i32) {
    %c0_i32 = arith.constant 0 : i32
    %c0_i32_0 = arith.constant 0 : i32
    %c0_i32_1 = arith.constant 0 : i32
    return %c0_i32, %c0_i32_0 : i32, i32
  }
  func.func @transform_4(%arg0: i32) -> (i32, i32) {
    %c0_i32 = arith.constant 0 : i32
    %c0_i32_0 = arith.constant 0 : i32
    %c0_i32_1 = arith.constant 0 : i32
    return %c0_i32, %c0_i32_0 : i32, i32
  }
  func.func @transform_5(%arg0: i32) -> (i32, i32) {
    %c0_i32 = arith.constant 0 : i32
    %c0_i32_0 = arith.constant 0 : i32
    %c0_i32_1 = arith.constant 0 : i32
    return %c0_i32, %c0_i32_0 : i32, i32
  }
  func.func @transform_6(%arg0: i32) -> (i32, i32) {
    %c0_i32 = arith.constant 0 : i32
    %c0_i32_0 = arith.constant 0 : i32
    %c0_i32_1 = arith.constant 0 : i32
    return %c0_i32, %c0_i32_0 : i32, i32
  }
  func.func @transform_7(%arg0: i32) -> (i32, i32) {
    %c0_i32 = arith.constant 0 : i32
    %c0_i32_0 = arith.constant 0 : i32
    %c0_i32_1 = arith.constant 0 : i32
    return %c0_i32, %c0_i32_0 : i32, i32
  }
  func.func @transform_8(%arg0: i32) -> (i32, i32) {
    %c0_i32 = arith.constant 0 : i32
    %c0_i32_0 = arith.constant 0 : i32
    %c0_i32_1 = arith.constant 0 : i32
    return %c0_i32, %c0_i32_0 : i32, i32
  }
  func.func @transform_9(%arg0: i32) -> (i32, i32) {
    %c0_i32 = arith.constant 0 : i32
    %c0_i32_0 = arith.constant 0 : i32
    %c0_i32_1 = arith.constant 0 : i32
    return %c0_i32, %c0_i32_0 : i32, i32
  }
  func.func @transform_10(%arg0: i32) -> (i32, i32) {
    %c0_i32 = arith.constant 0 : i32
    %c0_i32_0 = arith.constant 0 : i32
    %c0_i32_1 = arith.constant 0 : i32
    return %c0_i32, %c0_i32_0 : i32, i32
  }
}

</mosaic_0001>

<bundles_post_ra>
// kernel: lstm_forward.1
= control target key start
LH: loop header
LB: loop body
LE: loop exit
PB: predicated region body
PF: predicated region fallthrough
CT: control target
= control target key end

     0   :  { %vm65_vm0 = vcmask 130048   ;;  %v2756_v0 = vmov 0.0|0.0   ;;  %vm2757_vm1 = vmmov 0   ;;  %v2758_v4 = vmov 0.0   ;;  %s3309_s2 = inlined_call_operand.vmem [shape: f32[16,128], index: 2, kind: input, shape index: {}]   ;;  %s3310_s3 = inlined_call_operand.vmem [shape: f32[32,128], index: 3, kind: input, shape index: {}]   ;;  %s3311_s1 = inlined_call_operand.vmem [shape: f32[64,16], index: 1, kind: input, shape index: {}]   ;;  %s3312_s0 = inlined_call_operand.vmem [shape: s32[8,1], index: 0, kind: input, shape index: {}]   ;;  %s3313_s4 = inlined_call_operand.vmem [shape: f32[1,128], index: 4, kind: input, shape index: {}]   ;;  %s3314_s5 = inlined_call_operand.vmem [shape: f32[32,128], index: 5, kind: input, shape index: {}]   ;;  %s3315_s6 = inlined_call_operand.vmem [shape: f32[32,128], index: 6, kind: input, shape index: {}]   ;;  %s3316_s7 = inlined_call_operand.vmem [shape: f32[1,128], index: 7, kind: input, shape index: {}]   ;;  %s3317_s8 = inlined_call_operand.vmem [shape: f32[32,5], index: 8, kind: input, shape index: {}]   ;;  %s3318_s9 = inlined_call_operand.vmem [shape: f32[1,5], index: 9, kind: input, shape index: {}]   ;;  %s3319_s10 = inlined_call_operand.vmem [shape: f32[8,128], index: 10, kind: output, shape index: {}]  }
   0x1   :  { %2506 = vmatprep.subr.bf16.mxu1 %v2756_v0  ;;  %v52_v1 = vld [vmem:[%s3309_s2] sm:$0xff]  ;;  %v53_v2 = vld [vmem:[%s3309_s2 + $0x8] sm:$0xff]  ;;  %2303 = vmatprep.mubr.msk.f32.mxu1 %vm2757_vm1, %v2758_v4  ;;  %v56_v9 = vld [vmem:[%s3310_s3 + $0x10] sm:$0xff]  ;;  %v2759_v13 = vmov 0   ;;  %vm204_vm4 = vcmask 261120  }
   0x2   :  { %v54_v3 = vld [vmem:[%s3310_s3] sm:$0xff]  ;;  %v2502_v5 = vpack.c.bf16 %v53_v2, %v52_v1  ;;  %v55_v6 = vld [vmem:[%s3310_s3 + $0x8] sm:$0xff]  ;;  %v57_v10 = vld [vmem:[%s3310_s3 + $0x18] sm:$0xff]  ;;  %2622 = vset.pattern.permute.xlu1 %v2759_v13  ;;  %2623 = vset.pattern.permute.xlu0 %v2759_v13 }
   0x3   :  { %v44_v7 = vld [vmem:[%s3311_s1] sm:$0xff]  ;;  %v2835_v8 = vpack.c.bf16 %v55_v6, %v54_v3  ;;  %v45_v11 = vld [vmem:[%s3311_s1 + $0x8] sm:$0xff]  ;;  %v2848_v12 = vpack.c.bf16 %v57_v10, %v56_v9  ;;  %v46_v55 = vld [vmem:[%s3311_s1 + $0x10] sm:$0xff] }
   0x4   :  { %2283 = vmatprep.mubr.msk.f32.mxu0 %vm65_vm0, %v44_v7  ;;  %2503 = vmatprep.subr.bf16.mxu0 %v2502_v5  ;;  %v2870_v14 = vld [vmem:[%s3312_s0] sm:$0xff]  ;;  %s2760_s0 = smov 32   ;;  %v47_v56 = vld [vmem:[%s3311_s1 + $0x18] sm:$0xff]  ;;  %v49_v58 = vld [vmem:[%s3311_s1 + $0x28] sm:$0xff] }
   0x5   :  { %2508 = vmatpush3.bf16.msra.mxu1 %v2835_v8  ;;  %2505 = vmatpush3.bf16.msra.mxu0 %v2502_v5  ;;  %vm36_vm2 = vcmp.gt.s32.totalorder %v2870_v14, 0  ;;  %v2878_v16 = vld [vmem:[%s3313_s4] ss:$0 sm:$0xff]  ;;  %s2761_s4 = smov 64   ;;  %vm37_vm5 = vcmp.gt.s32.totalorder %v2870_v14, 1  ;;  %v50_v59 = vld [vmem:[%s3311_s1 + $0x30] sm:$0xff] }
   0x6   :  { %2509 = vmatprep.subr.bf16.mxu1 %v2756_v0  ;;  %2518 = vmatprep.subr.bf16.mxu0 %v2756_v0  ;;  %v303_v15 = vsel %vm36_vm2, 1, %v2759_v13  ;;  %v411_v44 = vsel %vm37_vm5, 1, %v2759_v13  ;;  %v48_v57 = vld [vmem:[%s3311_s1 + $0x20] sm:$0xff]  ;;  %v51_v60 = vld [vmem:[%s3311_s1 + $0x38] sm:$0xff]  ;;  %vm38_vm7 = vcmp.gt.s32.totalorder %v2870_v14, 2  ;;  %vm39_vm9 = vcmp.gt.s32.totalorder %v2870_v14, 3 }
   0x7   :  { %305 = vperm.xlu1 %2622, %v303_v15   ;;  %vm40_vm11 = vcmp.gt.s32.totalorder %v2870_v14, 4  ;;  %vm41_vm13 = vcmp.gt.s32.totalorder %v2870_v14, 5  ;;  %vm42_vm15 = vcmp.gt.s32.totalorder %v2870_v14, 6  ;;  %vm43_vm2 = vcmp.gt.s32.totalorder %v2870_v14, 7 }
   0x8   :  { %2284 = vmatmul.mubr.msk.f32.vlgmr.msra.gmra.mrb[0].mxu0 %vm65_vm0, %v45_v11 }
   0x9   :  { %2511 = vmatpush3.bf16.msra.mxu1 %v2848_v12  ;;  %2520 = vmatpush3.bf16.msra.mxu0 %v2835_v8 }
   0xa   :  { %2512 = vmatprep.subr.bf16.mxu1 %v2756_v0  ;;  %2521 = vmatprep.subr.bf16.mxu0 %v2756_v0 }
   0xb   :  { %2286 = vmatprep.mubr.msk.f32.mxu0 %vm65_vm0, %v46_v55 }
   0xc   :  { %2304 = vmatmul.mubr.f32.vlgmr.msra.gmra.mrb[0].mxu1 %v2758_v4  ;;  %2287 = vmatmul.mubr.msk.f32.gmra.mrb[2].mxu0 %vm65_vm0, %v47_v56 }
   0xd   :  { %2514 = vmatpush3.bf16.msra.mxu1 %v2835_v8  ;;  %2314 = vmatprep.mubr.msk.f32.mxu1 %vm2757_vm1, %v2758_v4 }
   0xe   :  { %2515 = vmatprep.subr.bf16.mxu1 %v2756_v0  ;;  %2523 = vmatpush3.bf16.msra.mxu0 %v2848_v12 }
   0xf   :  { %2530 = vmatprep.subr.bf16.mxu0 %v2756_v0  ;;  %2289 = vmatprep.mubr.msk.f32.mxu0 %vm65_vm0, %v48_v57 }
  0x10   :  { %2290 = vmatmul.mubr.msk.f32.gmra.mrb[4].mxu0 %vm65_vm0, %v49_v58 }
  0x11   :  { %2517 = vmatpush3.bf16.msra.mxu1 %v2848_v12  ;;  %2292 = vmatprep.mubr.msk.f32.mxu0 %vm65_vm0, %v50_v59 }
  0x12   :  { %2524 = vmatprep.subr.bf16.mxu1 %v2756_v0 }
  0x14   :  { %2293 = vmatmul.mubr.msk.f32.gmra.mrb[6].mxu0 %vm65_vm0, %v51_v60 }
  0x15   :  { %2325 = vmatprep.mubr.msk.f32.mxu0 %vm2757_vm1, %v2758_v4 }
  0x86   :  { %v2884_v34 = vpop.permute.xlu1 %305 }
  0x87   :  { %vm307_vm3 = vcmp.eq.s32.totalorder %v2884_v34, 1 }
  0xdb   :  { %v2285_v17 = vpop.f32.mrb[0].mxu0 }
  0xdc   :  { %v156_v18 = vpop.f32.mrb[1].mxu0  ;;  %v162_v39 = vadd.f32 %v2285_v17, %v2878_v16 }
  0xdd   :  { %v157_v19 = vadd.f32 %v2878_v16, %v156_v18 }
  0xdf   :  { %v274_v20 = vpop.f32.mrb[0].mxu1  ;;  %v2288_v3 = vpop.f32.mrb[2].mxu0 }
  0xe0   :  { %v278_v21 = vadd.f32 %v274_v20, %v157_v19  ;;  %v2305_v22 = vpop.f32.mrb[1].mxu1  ;;  %v166_v5 = vpop.f32.mrb[3].mxu0 }
  0xe1   :  { %v167_v15 = vadd.f32 %v2878_v16, %v166_v5 }
  0xe2   :  { %2624 = vtanh.f32 %v278_v21  ;;  %v2130_v24 = vmul.f32 -1.442695, %v278_v21  ;;  %v519_v21 = vsel %vm38_vm7, 1, %v2759_v13 }
  0xe3   :  { %v2940_v6 = vpop.f32.mrb[4].mxu0 }
  0xe4   :  { %2626 = vpow2.f32 %v2130_v24  ;;  %v2942_v7 = vpop.f32.mrb[5].mxu0 }
  0xe7   :  { %v2944_v9 = vpop.f32.mrb[6].mxu0 }
  0xe8   :  { %v2946_v10 = vpop.f32.mrb[7].mxu0 }
  0xec   :  { %v2625_v23 = vpop.eup %2624 }
  0xed   :  { %288 = vrot.lane.b32.xlu0 %v2625_v23, %s2760_s0 }
  0xee   :  { %v2627_v25 = vpop.eup %2626 }
  0xef   :  { %v282_v26 = vadd.f32 1.0, %v2627_v25 }
  0xf1   :  { %2628 = vrcp.f32 %v282_v26 }
  0xfb   :  { %v2629_v27 = vpop.eup %2628 }
  0xfc   :  { %v286_v30 = vmul.f32 0.0, %v2629_v27 }
 0x15f   :  { %v289_v28 = vpop.permute.xlu0 %288 }
 0x160   :  { %v291_v29 = vmul.f32 %v2629_v27, %v289_v28 }
 0x162   :  { %293 = vrot.lane.b32.xlu0 %v291_v29, %s2760_s0 }
 0x1d4   :  { %v294_v31 = vpop.permute.xlu0 %293 }
 0x1d5   :  { %v296_v32 = vadd.f32 %v294_v31, %v286_v30 }
 0x1d7   :  { %2630 = vtanh.f32 %v296_v32  ;;  %v309_v51 = vsel %vm307_vm3, %v296_v32, 0.0 }
 0x1e1   :  { %v2631_v33 = vpop.eup %2630 }
 0x1e2   :  { %299 = vrot.lane.b32.xlu1 %v2631_v33, %s2760_s0 }
 0x254   :  { %v300_v35 = vpop.permute.xlu1 %299 }
 0x255   :  { %v302_v36 = vmul.f32 %v2629_v27, %v300_v35 }
 0x257   :  { %v308_v37 = vsel %vm307_vm3, %v302_v36, 0.0 }
 0x258   :  { %312 = vrot.lane.b32.xlu0 %v308_v37, %s2761_s4 }
 0x2ca   :  { %v2890_v38 = vpop.permute.xlu0 %312 }
 0x2cb   :  { %2315 = vmatmul.mubr.msk.f32.vlgmr.msra.gmra.mrb[2].mxu1 %vm204_vm4, %v2890_v38 }
 0x2cc   :  { %2526 = vmatpush3.bf16.msra.mxu1 %v2835_v8  ;;  %2336 = vmatprep.mubr.msk.f32.mxu1 %vm2757_vm1, %v2758_v4 }
 0x2cd   :  { %2527 = vmatprep.subr.bf16.mxu1 %v2756_v0 }
 0x2d0   :  { %2529 = vmatpush3.bf16.msra.mxu1 %v2848_v12 }
 0x2d1   :  { %2536 = vmatprep.subr.bf16.mxu1 %v2756_v0 }
 0x39e   :  { %v382_v40 = vpop.f32.mrb[2].mxu1 }
 0x39f   :  { %v386_v41 = vadd.f32 %v382_v40, %v162_v39  ;;  %v2316_v42 = vpop.f32.mrb[3].mxu1  ;;  %v172_v40 = vadd.f32 %v2288_v3, %v2878_v16 }
 0x3a1   :  { %2632 = vtanh.f32 %v386_v41  ;;  %v2132_v45 = vmul.f32 -1.442695, %v386_v41 }
 0x3a3   :  { %2634 = vpow2.f32 %v2132_v45  ;;  %v627_v45 = vsel %vm39_vm9, 1, %v2759_v13 }
 0x3ab   :  { %v2633_v43 = vpop.eup %2632 }
 0x3ac   :  { %396 = vrot.lane.b32.xlu1 %v2633_v43, %s2760_s0 }
 0x3ad   :  { %v2635_v46 = vpop.eup %2634 }
 0x3ae   :  { %v390_v47 = vadd.f32 1.0, %v2635_v46 }
 0x3b0   :  { %413 = vperm.xlu1 %2622, %v411_v44   ;;  %2636 = vrcp.f32 %v390_v47 }
 0x3ba   :  { %v2637_v48 = vpop.eup %2636 }
 0x3bb   :  { %v394_v52 = vmul.f32 %v2637_v48, %v309_v51 }
 0x41e   :  { %v397_v49 = vpop.permute.xlu1 %396 }
 0x41f   :  { %v399_v50 = vmul.f32 %v2637_v48, %v397_v49 }
 0x421   :  { %401 = vrot.lane.b32.xlu0 %v399_v50, %s2760_s0 }
 0x42f   :  { %v2934_v62 = vpop.permute.xlu1 %413 }
 0x430   :  { %vm415_vm6 = vcmp.eq.s32.totalorder %v2934_v62, 1 }
 0x493   :  { %v402_v53 = vpop.permute.xlu0 %401 }
 0x494   :  { %v404_v54 = vadd.f32 %v402_v53, %v394_v52 }
 0x496   :  { %2638 = vtanh.f32 %v404_v54  ;;  %v417_v28 = vsel %vm415_vm6, %v404_v54, %v309_v51 }
 0x4a0   :  { %v2639_v61 = vpop.eup %2638 }
 0x4a1   :  { %407 = vrot.lane.b32.xlu0 %v2639_v61, %s2760_s0 }
 0x513   :  { %v408_v63 = vpop.permute.xlu0 %407 }
 0x514   :  { %v410_v1 = vmul.f32 %v2637_v48, %v408_v63  ;;  %v177_v63 = vadd.f32 %v2878_v16, %v2942_v7 }
 0x516   :  { %v416_v2 = vsel %vm415_vm6, %v410_v1, %v308_v37 }
 0x517   :  { %420 = vrot.lane.b32.xlu1 %v416_v2, %s2761_s4 }
 0x589   :  { %v2948_v11 = vpop.permute.xlu1 %420 }
 0x58a   :  { %2326 = vmatmul.mubr.msk.f32.vlgmr.msra.gmra.mrb[8].mxu0 %vm204_vm4, %v2948_v11 }
 0x58b   :  { %2532 = vmatpush3.bf16.msra.mxu0 %v2835_v8  ;;  %2347 = vmatprep.mubr.msk.f32.mxu0 %vm2757_vm1, %v2758_v4 }
 0x58c   :  { %2533 = vmatprep.subr.bf16.mxu0 %v2756_v0 }
 0x58f   :  { %2535 = vmatpush3.bf16.msra.mxu0 %v2848_v12 }
 0x590   :  { %2542 = vmatprep.subr.bf16.mxu0 %v2756_v0 }
 0x65d   :  { %v490_v17 = vpop.f32.mrb[8].mxu0 }
 0x65e   :  { %v494_v18 = vadd.f32 %v490_v17, %v167_v15  ;;  %v2327_v19 = vpop.f32.mrb[9].mxu0  ;;  %v735_v15 = vsel %vm40_vm11, 1, %v2759_v13 }
 0x660   :  { %2640 = vtanh.f32 %v494_v18  ;;  %v2134_v22 = vmul.f32 -1.442695, %v494_v18 }
 0x662   :  { %2642 = vpow2.f32 %v2134_v22 }
 0x66a   :  { %v2641_v20 = vpop.eup %2640 }
 0x66b   :  { %504 = vrot.lane.b32.xlu0 %v2641_v20, %s2760_s0 }
 0x66c   :  { %v2643_v23 = vpop.eup %2642 }
 0x66d   :  { %v498_v24 = vadd.f32 1.0, %v2643_v23 }
 0x66f   :  { %521 = vperm.xlu0 %2623, %v519_v21   ;;  %2644 = vrcp.f32 %v498_v24 }
 0x679   :  { %v2645_v25 = vpop.eup %2644 }
 0x67a   :  { %v502_v29 = vmul.f32 %v2645_v25, %v417_v28 }
 0x6dd   :  { %v505_v26 = vpop.permute.xlu0 %504 }
 0x6de   :  { %v507_v27 = vmul.f32 %v2645_v25, %v505_v26 }
 0x6e0   :  { %509 = vrot.lane.b32.xlu1 %v507_v27, %s2760_s0 }
 0x6ee   :  { %v2966_v33 = vpop.permute.xlu0 %521 }
 0x6ef   :  { %vm523_vm8 = vcmp.eq.s32.totalorder %v2966_v33, 1 }
 0x752   :  { %v510_v30 = vpop.permute.xlu1 %509 }
 0x753   :  { %v512_v31 = vadd.f32 %v510_v30, %v502_v29 }
 0x755   :  { %2646 = vtanh.f32 %v512_v31  ;;  %v525_v52 = vsel %vm523_vm8, %v512_v31, %v417_v28 }
 0x75f   :  { %v2647_v32 = vpop.eup %2646 }
 0x760   :  { %515 = vrot.lane.b32.xlu1 %v2647_v32, %s2760_s0  ;;  %v182_v32 = vadd.f32 %v2940_v6, %v2878_v16 }
 0x7d2   :  { %v516_v35 = vpop.permute.xlu1 %515 }
 0x7d3   :  { %v518_v36 = vmul.f32 %v2645_v25, %v516_v35 }
 0x7d5   :  { %v524_v37 = vsel %vm523_vm8, %v518_v36, %v416_v2 }
 0x7d6   :  { %528 = vrot.lane.b32.xlu1 %v524_v37, %s2761_s4 }
 0x848   :  { %v2972_v39 = vpop.permute.xlu1 %528 }
 0x849   :  { %2337 = vmatmul.mubr.msk.f32.vlgmr.msra.gmra.mrb[4].mxu1 %vm204_vm4, %v2972_v39 }
 0x84a   :  { %2538 = vmatpush3.bf16.msra.mxu1 %v2835_v8  ;;  %2358 = vmatprep.mubr.msk.f32.mxu1 %vm2757_vm1, %v2758_v4 }
 0x84b   :  { %2539 = vmatprep.subr.bf16.mxu1 %v2756_v0 }
 0x84e   :  { %2541 = vmatpush3.bf16.msra.mxu1 %v2848_v12 }
 0x84f   :  { %2548 = vmatprep.subr.bf16.mxu1 %v2756_v0 }
 0x91c   :  { %v598_v41 = vpop.f32.mrb[4].mxu1 }
 0x91d   :  { %v602_v42 = vadd.f32 %v598_v41, %v172_v40  ;;  %v2338_v43 = vpop.f32.mrb[5].mxu1 }
 0x91f   :  { %2648 = vtanh.f32 %v602_v42  ;;  %v2136_v46 = vmul.f32 -1.442695, %v602_v42 }
 0x921   :  { %2650 = vpow2.f32 %v2136_v46 }
 0x929   :  { %v2649_v44 = vpop.eup %2648 }
 0x92a   :  { %612 = vrot.lane.b32.xlu0 %v2649_v44, %s2760_s0 }
 0x92b   :  { %v2651_v47 = vpop.eup %2650 }
 0x92c   :  { %v606_v48 = vadd.f32 1.0, %v2651_v47 }
 0x92e   :  { %629 = vperm.xlu0 %2623, %v627_v45   ;;  %2652 = vrcp.f32 %v606_v48 }
 0x938   :  { %v2653_v49 = vpop.eup %2652 }
 0x939   :  { %v610_v53 = vmul.f32 %v2653_v49, %v525_v52 }
 0x99c   :  { %v613_v50 = vpop.permute.xlu0 %612 }
 0x99d   :  { %v615_v51 = vmul.f32 %v2653_v49, %v613_v50  ;;  %v1066_v50 = vld [vmem:[%s3314_s5 + $0x8] sm:$0xff] }
 0x99f   :  { %617 = vrot.lane.b32.xlu1 %v615_v51, %s2760_s0 }
 0x9ad   :  { %v2990_v57 = vpop.permute.xlu0 %629 }
 0x9ae   :  { %vm631_vm10 = vcmp.eq.s32.totalorder %v2990_v57, 1 }
 0xa11   :  { %v618_v54 = vpop.permute.xlu1 %617 }
 0xa12   :  { %v620_v55 = vadd.f32 %v618_v54, %v610_v53 }
 0xa14   :  { %2654 = vtanh.f32 %v620_v55  ;;  %v633_v22 = vsel %vm631_vm10, %v620_v55, %v525_v52 }
 0xa1e   :  { %v2655_v56 = vpop.eup %2654 }
 0xa1f   :  { %623 = vrot.lane.b32.xlu1 %v2655_v56, %s2760_s0 }
 0xa91   :  { %v624_v58 = vpop.permute.xlu1 %623 }
 0xa92   :  { %v626_v59 = vmul.f32 %v2653_v49, %v624_v58  ;;  %v1065_v49 = vld [vmem:[%s3314_s5] sm:$0xff]  ;;  %v1067_v58 = vld [vmem:[%s3314_s5 + $0x10] sm:$0xff] }
 0xa93   :  { %v2554_v51 = vpack.c.bf16 %v1066_v50, %v1065_v49 }
 0xa94   :  { %v632_v60 = vsel %vm631_vm10, %v626_v59, %v524_v37  ;;  %v1068_v59 = vld [vmem:[%s3314_s5 + $0x18] sm:$0xff] }
 0xa95   :  { %636 = vrot.lane.b32.xlu0 %v632_v60, %s2761_s4 }
 0xb07   :  { %v2996_v61 = vpop.permute.xlu0 %636 }
 0xb08   :  { %2348 = vmatmul.mubr.msk.f32.vlgmr.msra.gmra.mrb[10].mxu0 %vm204_vm4, %v2996_v61 }
 0xb09   :  { %2544 = vmatpush3.bf16.msra.mxu0 %v2835_v8  ;;  %2369 = vmatprep.mubr.msk.f32.mxu0 %vm2757_vm1, %v2758_v4 }
 0xb0a   :  { %2545 = vmatprep.subr.bf16.mxu0 %v2756_v0 }
 0xb0d   :  { %2547 = vmatpush3.bf16.msra.mxu0 %v2848_v12 }
 0xb0e   :  { %2555 = vmatprep.subr.bf16.mxu0 %v2554_v51 }
 0xbdb   :  { %v706_v1 = vpop.f32.mrb[10].mxu0 }
 0xbdc   :  { %v710_v2 = vadd.f32 %v706_v1, %v177_v63  ;;  %v2349_v3 = vpop.f32.mrb[11].mxu0 }
 0xbde   :  { %2656 = vtanh.f32 %v710_v2  ;;  %v2138_v17 = vmul.f32 -1.442695, %v710_v2 }
 0xbe0   :  { %2658 = vpow2.f32 %v2138_v17  ;;  %v951_v17 = vsel %vm42_vm15, 1, %v2759_v13 }
 0xbe8   :  { %v2657_v5 = vpop.eup %2656 }
 0xbe9   :  { %720 = vrot.lane.b32.xlu1 %v2657_v5, %s2760_s0 }
 0xbea   :  { %v2659_v18 = vpop.eup %2658 }
 0xbeb   :  { %v714_v19 = vadd.f32 1.0, %v2659_v18 }
 0xbed   :  { %737 = vperm.xlu1 %2622, %v735_v15   ;;  %2660 = vrcp.f32 %v714_v19 }
 0xbf7   :  { %v2661_v20 = vpop.eup %2660 }
 0xbf8   :  { %v718_v23 = vmul.f32 %v2661_v20, %v633_v22 }
 0xc5b   :  { %v721_v21 = vpop.permute.xlu1 %720 }
 0xc5c   :  { %v723_v7 = vmul.f32 %v2661_v20, %v721_v21 }
 0xc5e   :  { %725 = vrot.lane.b32.xlu0 %v723_v7, %s2760_s0 }
 0xc6c   :  { %v3014_v27 = vpop.permute.xlu1 %737 }
 0xc6d   :  { %vm739_vm12 = vcmp.eq.s32.totalorder %v3014_v27, 1 }
 0xcd0   :  { %v726_v24 = vpop.permute.xlu0 %725 }
 0xcd1   :  { %v728_v25 = vadd.f32 %v726_v24, %v718_v23 }
 0xcd3   :  { %2662 = vtanh.f32 %v728_v25  ;;  %v741_v45 = vsel %vm739_vm12, %v728_v25, %v633_v22 }
 0xcdd   :  { %v2663_v26 = vpop.eup %2662 }
 0xcde   :  { %731 = vrot.lane.b32.xlu0 %v2663_v26, %s2760_s0 }
 0xd50   :  { %v732_v28 = vpop.permute.xlu0 %731 }
 0xd51   :  { %v734_v29 = vmul.f32 %v2661_v20, %v732_v28 }
 0xd53   :  { %v740_v30 = vsel %vm739_vm12, %v734_v29, %v632_v60  ;;  %v2558_v60 = vpack.c.bf16 %v1068_v59, %v1067_v58 }
 0xd54   :  { %744 = vrot.lane.b32.xlu1 %v740_v30, %s2761_s4 }
 0xdc6   :  { %v745_v31 = vpop.permute.xlu1 %744 }
 0xdc7   :  { %2359 = vmatmul.mubr.msk.f32.vlgmr.msra.gmra.mrb[6].mxu1 %vm204_vm4, %v745_v31 }
 0xdc8   :  { %2550 = vmatpush3.bf16.msra.mxu1 %v2835_v8  ;;  %2380 = vmatprep.mubr.msk.f32.mxu1 %vm2757_vm1, %v2758_v4  ;;  %v843_v8 = vsel %vm41_vm13, 1, %v2759_v13 }
 0xdc9   :  { %2551 = vmatprep.subr.bf16.mxu1 %v2756_v0 }
 0xdcc   :  { %2553 = vmatpush3.bf16.msra.mxu1 %v2848_v12 }
 0xdcd   :  { %2562 = vmatprep.subr.bf16.mxu1 %v2756_v0 }
 0xe9a   :  { %v814_v35 = vpop.f32.mrb[6].mxu1 }
 0xe9b   :  { %v818_v36 = vadd.f32 %v814_v35, %v182_v32  ;;  %v2360_v37 = vpop.f32.mrb[7].mxu1  ;;  %v1071_v35 = vld [vmem:[%s3315_s6 + $0x10] sm:$0xff] }
 0xe9d   :  { %2664 = vtanh.f32 %v818_v36  ;;  %v2140_v41 = vmul.f32 -1.442695, %v818_v36  ;;  %v1072_v36 = vld [vmem:[%s3315_s6 + $0x18] sm:$0xff] }
 0xe9e   :  { %v3112_v37 = vpack.c.bf16 %v1072_v36, %v1071_v35 }
 0xe9f   :  { %2666 = vpow2.f32 %v2140_v41 }
 0xea7   :  { %v2665_v40 = vpop.eup %2664 }
 0xea8   :  { %828 = vrot.lane.b32.xlu0 %v2665_v40, %s2760_s0 }
 0xea9   :  { %v2667_v12 = vpop.eup %2666 }
 0xeaa   :  { %v822_v42 = vadd.f32 1.0, %v2667_v12 }
 0xeac   :  { %845 = vperm.xlu0 %2623, %v843_v8   ;;  %2668 = vrcp.f32 %v822_v42 }
 0xeb6   :  { %v2669_v43 = vpop.eup %2668 }
 0xeb7   :  { %v826_v46 = vmul.f32 %v2669_v43, %v741_v45 }
 0xf1a   :  { %v829_v44 = vpop.permute.xlu0 %828 }
 0xf1b   :  { %v831_v6 = vmul.f32 %v2669_v43, %v829_v44 }
 0xf1d   :  { %833 = vrot.lane.b32.xlu1 %v831_v6, %s2760_s0 }
 0xf2b   :  { %v3042_v53 = vpop.permute.xlu0 %845 }
 0xf2c   :  { %vm847_vm14 = vcmp.eq.s32.totalorder %v3042_v53, 1 }
 0xf8f   :  { %v834_v47 = vpop.permute.xlu1 %833 }
 0xf90   :  { %v836_v48 = vadd.f32 %v834_v47, %v826_v46  ;;  %v3146_v46 = vld [vmem:[%s3316_s7] ss:$0 sm:$0xff] }
 0xf92   :  { %2670 = vtanh.f32 %v836_v48  ;;  %v3089_v24 = vsel %vm847_vm14, %v836_v48, %v741_v45 }
 0xf9c   :  { %v2671_v52 = vpop.eup %2670 }
 0xf9d   :  { %839 = vrot.lane.b32.xlu1 %v2671_v52, %s2760_s0 }
0x100f   :  { %v840_v54 = vpop.permute.xlu1 %839 }
0x1010   :  { %v842_v55 = vmul.f32 %v2669_v43, %v840_v54  ;;  %v192_v43 = vadd.f32 %v2944_v9, %v2878_v16 }
0x1012   :  { %v3047_v56 = vsel %vm847_vm14, %v842_v55, %v740_v30  ;;  %v1069_v30 = vld [vmem:[%s3315_s6] sm:$0xff] }
0x1013   :  { %852 = vrot.lane.b32.xlu0 %v3047_v56, %s2761_s4 }
0x1085   :  { %v853_v63 = vpop.permute.xlu0 %852 }
0x1086   :  { %2370 = vmatmul.mubr.msk.f32.vlgmr.msra.gmra.mrb[12].mxu0 %vm204_vm4, %v853_v63 }
0x1087   :  { %2557 = vmatpush3.bf16.msra.mxu0 %v2554_v51  ;;  %2391 = vmatprep.mubr.msk.f32.mxu0 %vm204_vm4, %v2890_v38  ;;  %v187_v38 = vadd.f32 %v2878_v16, %v2946_v10 }
0x1088   :  { %2559 = vmatprep.subr.bf16.mxu0 %v2558_v60 }
0x108b   :  { %2561 = vmatpush3.bf16.msra.mxu0 %v2558_v60 }
0x108c   :  { %2574 = vmatprep.subr.bf16.mxu0 %v2756_v0 }
0x108e   :  { %2392 = vmatmul.mubr.msk.f32.vlgmr.msra.gmra.mrb[14].mxu0 %vm204_vm4, %v2948_v11 }
0x108f   :  { %2394 = vmatprep.mubr.msk.f32.mxu0 %vm204_vm4, %v2972_v39 }
0x1092   :  { %2395 = vmatmul.mubr.msk.f32.gmra.mrb[16].mxu0 %vm204_vm4, %v2996_v61 }
0x1093   :  { %2397 = vmatprep.mubr.msk.f32.mxu0 %vm204_vm4, %v745_v31  ;;  %v1070_v31 = vld [vmem:[%s3315_s6 + $0x8] sm:$0xff] }
0x1094   :  { %v3102_v32 = vpack.c.bf16 %v1070_v31, %v1069_v30 }
0x1096   :  { %2398 = vmatmul.mubr.msk.f32.gmra.mrb[18].mxu0 %vm204_vm4, %v853_v63 }
0x1097   :  { %2576 = vmatpush3.bf16.msra.mxu0 %v3102_v32 }
0x1098   :  { %2577 = vmatprep.subr.bf16.mxu0 %v2756_v0 }
0x109b   :  { %2579 = vmatpush3.bf16.msra.mxu0 %v3112_v37 }
0x109c   :  { %2586 = vmatprep.subr.bf16.mxu0 %v2756_v0 }
0x1159   :  { %v922_v1 = vpop.f32.mrb[12].mxu0 }
0x115a   :  { %v926_v2 = vadd.f32 %v922_v1, %v187_v38  ;;  %v2371_v3 = vpop.f32.mrb[13].mxu0 }
0x115c   :  { %2672 = vtanh.f32 %v926_v2  ;;  %v2142_v19 = vmul.f32 -1.442695, %v926_v2 }
0x115e   :  { %2674 = vpow2.f32 %v2142_v19 }
0x1161   :  { %v3071_v5 = vpop.f32.mrb[14].mxu0 }
0x1162   :  { %v3073_v11 = vpop.f32.mrb[15].mxu0  ;;  %v1157_v14 = vadd.f32 %v3071_v5, %v3146_v46 }
0x1163   :  { %v1152_v47 = vadd.f32 %v3146_v46, %v3073_v11 }
0x1165   :  { %v3075_v15 = vpop.f32.mrb[16].mxu0 }
0x1166   :  { %v2673_v39 = vpop.eup %2672  ;;  %v3078_v61 = vpop.f32.mrb[17].mxu0  ;;  %v1167_v62 = vadd.f32 %v3075_v15, %v3146_v46 }
0x1167   :  { %936 = vrot.lane.b32.xlu1 %v2673_v39, %s2760_s0 }
0x1168   :  { %v2675_v20 = vpop.eup %2674 }
0x1169   :  { %v3082_v10 = vpop.f32.mrb[18].mxu0  ;;  %v930_v21 = vadd.f32 1.0, %v2675_v20 }
0x116a   :  { %v3084_v18 = vpop.f32.mrb[19].mxu0  ;;  %v1177_v57 = vadd.f32 %v3082_v10, %v3146_v46 }
0x116b   :  { %953 = vperm.xlu1 %2622, %v951_v17   ;;  %2676 = vrcp.f32 %v930_v21  ;;  %v1172_v33 = vadd.f32 %v3146_v46, %v3084_v18 }
0x1175   :  { %v2677_v7 = vpop.eup %2676 }
0x1176   :  { %v934_v25 = vmul.f32 %v2677_v7, %v3089_v24 }
0x11d9   :  { %v937_v22 = vpop.permute.xlu1 %936 }
0x11da   :  { %v939_v23 = vmul.f32 %v2677_v7, %v937_v22 }
0x11dc   :  { %941 = vrot.lane.b32.xlu0 %v939_v23, %s2760_s0 }
0x11ea   :  { %v3116_v40 = vpop.permute.xlu1 %953 }
0x11eb   :  { %vm955_vm0 = vcmp.eq.s32.totalorder %v3116_v40, 1  ;;  %v2019_v40 = vld [vmem:[%s3317_s8 + $0x18] sm:$0xff] }
0x124e   :  { %v942_v26 = vpop.permute.xlu0 %941 }
0x124f   :  { %v3092_v28 = vadd.f32 %v942_v26, %v934_v25 }
0x1251   :  { %2678 = vtanh.f32 %v3092_v28  ;;  %v957_v35 = vsel %vm955_vm0, %v3092_v28, %v3089_v24 }
0x125b   :  { %v2679_v29 = vpop.eup %2678 }
0x125c   :  { %947 = vrot.lane.b32.xlu0 %v2679_v29, %s2760_s0 }
0x12ce   :  { %v948_v8 = vpop.permute.xlu0 %947 }
0x12cf   :  { %v950_v41 = vmul.f32 %v2677_v7, %v948_v8  ;;  %v1059_v7 = vsel %vm43_vm2, 1, %v2759_v13 }
0x12d1   :  { %v3122_v12 = vsel %vm955_vm0, %v950_v41, %v3047_v56 }
0x12d2   :  { %960 = vrot.lane.b32.xlu1 %v3122_v12, %s2761_s4 }
0x1344   :  { %v961_v42 = vpop.permute.xlu1 %960 }
0x1345   :  { %2381 = vmatmul.mubr.msk.f32.vlgmr.msra.gmra.mrb[8].mxu1 %vm204_vm4, %v961_v42  ;;  %2400 = vmatprep.mubr.msk.f32.mxu0 %vm204_vm4, %v961_v42 }
0x1346   :  { %2564 = vmatpush3.bf16.msra.mxu1 %v3102_v32  ;;  %2411 = vmatprep.mubr.msk.f32.mxu1 %vm2757_vm1, %v2758_v4 }
0x1347   :  { %2565 = vmatprep.subr.bf16.mxu1 %v2756_v0 }
0x134a   :  { %2567 = vmatpush3.bf16.msra.mxu1 %v3112_v37 }
0x134b   :  { %2568 = vmatprep.subr.bf16.mxu1 %v2756_v0 }
0x134d   :  { %2412 = vmatmul.mubr.f32.vlgmr.msra.gmra.mrb[10].mxu1 %v2758_v4 }
0x134e   :  { %2570 = vmatpush3.bf16.msra.mxu1 %v3102_v32  ;;  %2422 = vmatprep.mubr.msk.f32.mxu1 %vm2757_vm1, %v2758_v4 }
0x134f   :  { %2571 = vmatprep.subr.bf16.mxu1 %v2756_v0 }
0x1352   :  { %2573 = vmatpush3.bf16.msra.mxu1 %v3112_v37 }
0x1353   :  { %2580 = vmatprep.subr.bf16.mxu1 %v2756_v0 }
0x1418   :  { %v1030_v44 = vpop.f32.mrb[8].mxu1 }
0x1419   :  { %v1034_v6 = vadd.f32 %v1030_v44, %v192_v43  ;;  %v2382_v45 = vpop.f32.mrb[9].mxu1 }
0x141b   :  { %v2144_v1 = vmul.f32 -1.442695, %v1034_v6 }
0x1420   :  { %v1265_v48 = vpop.f32.mrb[10].mxu1 }
0x1421   :  { %v1269_v49 = vadd.f32 %v1265_v48, %v1152_v47  ;;  %v2413_v50 = vpop.f32.mrb[11].mxu1 }
0x1423   :  { %2680 = vtanh.f32 %v1269_v49  ;;  %v2154_v52 = vmul.f32 -1.442695, %v1269_v49 }
0x1425   :  { %2682 = vpow2.f32 %v2154_v52 }
0x142d   :  { %v2681_v51 = vpop.eup %2680 }
0x142e   :  { %1279 = vrot.lane.b32.xlu0 %v2681_v51, %s2760_s0 }
0x142f   :  { %v2683_v16 = vpop.eup %2682 }
0x1430   :  { %v1273_v9 = vadd.f32 1.0, %v2683_v16 }
0x1432   :  { %2684 = vrcp.f32 %v1273_v9 }
0x143c   :  { %v2685_v54 = vpop.eup %2684 }
0x143d   :  { %v1277_v58 = vmul.f32 0.0, %v2685_v54 }
0x14a0   :  { %v1280_v55 = vpop.permute.xlu0 %1279 }
0x14a1   :  { %v1282_v56 = vmul.f32 %v2685_v54, %v1280_v55 }
0x14a3   :  { %1284 = vrot.lane.b32.xlu1 %v1282_v56, %s2760_s0  ;;  %v1162_v56 = vadd.f32 %v3146_v46, %v3078_v61 }
0x1515   :  { %v1285_v59 = vpop.permute.xlu1 %1284 }
0x1516   :  { %v1287_v60 = vadd.f32 %v1285_v59, %v1277_v58 }
0x1518   :  { %2686 = vtanh.f32 %v1287_v60 }
0x1519   :  { %2688 = vtanh.f32 %v1034_v6  ;;  %v1295_v6 = vsel %vm307_vm3, %v1287_v60, 0.0 }
0x151a   :  { %2690 = vpow2.f32 %v2144_v1 }
0x1522   :  { %v2687_v63 = vpop.eup %2686 }
0x1523   :  { %1290 = vrot.lane.b32.xlu0 %v2687_v63, %s2760_s0  ;;  %v2689_v38 = vpop.eup %2688 }
0x1524   :  { %v2691_v2 = vpop.eup %2690 }
0x1525   :  { %v1038_v3 = vadd.f32 1.0, %v2691_v2 }
0x1527   :  { %1044 = vrot.lane.b32.xlu0 %v2689_v38, %s2760_s0  ;;  %2692 = vrcp.f32 %v1038_v3 }
0x1531   :  { %v2693_v19 = vpop.eup %2692 }
0x1532   :  { %v1042_v8 = vmul.f32 %v2693_v19, %v957_v35 }
0x1595   :  { %v1291_v11 = vpop.permute.xlu0 %1290 }
0x1596   :  { %v1293_v39 = vmul.f32 %v2685_v54, %v1291_v11 }
0x1598   :  { %v1294_v17 = vsel %vm307_vm3, %v1293_v39, 0.0 }
0x1599   :  { %1298 = vrot.lane.b32.xlu1 %v1294_v17, %s2761_s4  ;;  %v1045_v20 = vpop.permute.xlu0 %1044 }
0x159a   :  { %v1047_v21 = vmul.f32 %v2693_v19, %v1045_v20 }
0x159c   :  { %1049 = vrot.lane.b32.xlu0 %v1047_v21, %s2760_s0 }
0x15a0   :  { %1061 = vperm.xlu0 %2623, %v1059_v7  }
0x160b   :  { %v1299_v22 = vpop.permute.xlu1 %1298 }
0x160c   :  { %2423 = vmatmul.mubr.msk.f32.vlgmr.msra.gmra.mrb[12].mxu1 %vm204_vm4, %v1299_v22 }
0x160d   :  { %2582 = vmatpush3.bf16.msra.mxu1 %v3102_v32  ;;  %2444 = vmatprep.mubr.msk.f32.mxu1 %vm2757_vm1, %v2758_v4 }
0x160e   :  { %2583 = vmatprep.subr.bf16.mxu1 %v2756_v0  ;;  %v1050_v36 = vpop.permute.xlu0 %1049 }
0x160f   :  { %v1052_v5 = vadd.f32 %v1050_v36, %v1042_v8 }
0x1611   :  { %2585 = vmatpush3.bf16.msra.mxu1 %v3112_v37 }
0x1612   :  { %2592 = vmatprep.subr.bf16.mxu1 %v2756_v0 }
0x161f   :  { %v3178_v24 = vpop.permute.xlu0 %1061 }
0x1620   :  { %vm1063_vm5 = vcmp.eq.s32.totalorder %v3178_v24, 1 }
0x16df   :  { %v1368_v23 = vpop.f32.mrb[12].mxu1 }
0x16e0   :  { %v1372_v13 = vadd.f32 %v1368_v23, %v1157_v14  ;;  %v2424_v25 = vpop.f32.mrb[13].mxu1 }
0x16e2   :  { %2694 = vtanh.f32 %v1372_v13  ;;  %v2156_v29 = vmul.f32 -1.442695, %v1372_v13 }
0x16e4   :  { %2696 = vpow2.f32 %v2156_v29 }
0x16ec   :  { %v2695_v26 = vpop.eup %2694 }
0x16ed   :  { %1382 = vrot.lane.b32.xlu1 %v2695_v26, %s2760_s0 }
0x16ee   :  { %v2697_v30 = vpop.eup %2696 }
0x16ef   :  { %v1376_v31 = vadd.f32 1.0, %v2697_v30 }
0x16f1   :  { %2698 = vrcp.f32 %v1376_v31 }
0x16f2   :  { %2700 = vtanh.f32 %v1052_v5 }
0x16fb   :  { %v2699_v41 = vpop.eup %2698 }
0x16fc   :  { %v2701_v44 = vpop.eup %2700  ;;  %v1380_v45 = vmul.f32 %v2699_v41, %v1295_v6 }
0x175f   :  { %v1383_v42 = vpop.permute.xlu1 %1382 }
0x1760   :  { %v1385_v43 = vmul.f32 %v2699_v41, %v1383_v42 }
0x1762   :  { %1387 = vrot.lane.b32.xlu1 %v1385_v43, %s2760_s0 }
0x1766   :  { %1055 = vrot.lane.b32.xlu1 %v2701_v44, %s2760_s0 }
0x17d4   :  { %v1388_v47 = vpop.permute.xlu1 %1387 }
0x17d5   :  { %v1390_v48 = vadd.f32 %v1388_v47, %v1380_v45 }
0x17d7   :  { %2702 = vtanh.f32 %v1390_v48  ;;  %v1398_v61 = vsel %vm415_vm6, %v1390_v48, %v1295_v6 }
0x17d8   :  { %v1056_v28 = vpop.permute.xlu1 %1055 }
0x17d9   :  { %v1058_v49 = vmul.f32 %v2693_v19, %v1056_v28 }
0x17db   :  { %v1064_v50 = vsel %vm1063_vm5, %v1058_v49, %v3122_v12 }
0x17dc   :  { %1081 = vrot.lane.b32.xlu1 %v1064_v50, %s2761_s4 }
0x17e1   :  { %v2703_v51 = vpop.eup %2702 }
0x17e2   :  { %1393 = vrot.lane.b32.xlu0 %v2703_v51, %s2760_s0 }
0x184e   :  { %v1082_v34 = vpop.permute.xlu1 %1081 }
0x184f   :  { %2401 = vmatmul.mubr.msk.f32.gmra.mrb[20].mxu0 %vm204_vm4, %v1082_v34 }
0x1850   :  { %2433 = vmatprep.mubr.msk.f32.mxu0 %vm2757_vm1, %v2758_v4 }
0x1854   :  { %v1394_v52 = vpop.permute.xlu0 %1393 }
0x1855   :  { %v1396_v16 = vmul.f32 %v2699_v41, %v1394_v52 }
0x1857   :  { %v1397_v9 = vsel %vm415_vm6, %v1396_v16, %v1294_v17 }
0x1858   :  { %1401 = vrot.lane.b32.xlu0 %v1397_v9, %s2761_s4 }
0x18ca   :  { %v1402_v54 = vpop.permute.xlu0 %1401 }
0x18cb   :  { %2434 = vmatmul.mubr.msk.f32.vlgmr.msra.gmra.mrb[22].mxu0 %vm204_vm4, %v1402_v54 }
0x18cc   :  { %2588 = vmatpush3.bf16.msra.mxu0 %v3102_v32  ;;  %2455 = vmatprep.mubr.msk.f32.mxu0 %vm2757_vm1, %v2758_v4 }
0x18cd   :  { %2589 = vmatprep.subr.bf16.mxu0 %v2756_v0 }
0x18d0   :  { %2591 = vmatpush3.bf16.msra.mxu0 %v3112_v37 }
0x18d1   :  { %2598 = vmatprep.subr.bf16.mxu0 %v2756_v0 }
0x1922   :  { %v3199_v12 = vpop.f32.mrb[20].mxu0 }
0x1923   :  { %v3201_v55 = vpop.f32.mrb[21].mxu0  ;;  %v1187_v53 = vadd.f32 %v3199_v12, %v3146_v46 }
0x1924   :  { %v1182_v27 = vadd.f32 %v3146_v46, %v3201_v55 }
0x199e   :  { %v1471_v58 = vpop.f32.mrb[22].mxu0 }
0x199f   :  { %v1475_v59 = vadd.f32 %v1471_v58, %v1162_v56  ;;  %v2435_v60 = vpop.f32.mrb[23].mxu0 }
0x19a1   :  { %2704 = vtanh.f32 %v1475_v59  ;;  %v2158_v38 = vmul.f32 -1.442695, %v1475_v59 }
0x19a3   :  { %2706 = vpow2.f32 %v2158_v38 }
0x19ab   :  { %v2705_v63 = vpop.eup %2704 }
0x19ac   :  { %1485 = vrot.lane.b32.xlu1 %v2705_v63, %s2760_s0 }
0x19ad   :  { %v2707_v1 = vpop.eup %2706 }
0x19ae   :  { %v1479_v2 = vadd.f32 1.0, %v2707_v1 }
0x19b0   :  { %2708 = vrcp.f32 %v1479_v2 }
0x19ba   :  { %v2709_v3 = vpop.eup %2708 }
0x19bb   :  { %v1483_v17 = vmul.f32 %v2709_v3, %v1398_v61 }
0x1a1e   :  { %v1486_v11 = vpop.permute.xlu1 %1485 }
0x1a1f   :  { %v1488_v39 = vmul.f32 %v2709_v3, %v1486_v11 }
0x1a21   :  { %1490 = vrot.lane.b32.xlu0 %v1488_v39, %s2760_s0 }
0x1a93   :  { %v1491_v19 = vpop.permute.xlu0 %1490 }
0x1a94   :  { %v1493_v20 = vadd.f32 %v1491_v19, %v1483_v17 }
0x1a96   :  { %2710 = vtanh.f32 %v1493_v20  ;;  %v1501_v15 = vsel %vm523_vm8, %v1493_v20, %v1398_v61 }
0x1aa0   :  { %v2711_v21 = vpop.eup %2710 }
0x1aa1   :  { %1496 = vrot.lane.b32.xlu1 %v2711_v21, %s2760_s0 }
0x1b13   :  { %v1497_v7 = vpop.permute.xlu1 %1496 }
0x1b14   :  { %v1499_v22 = vmul.f32 %v2709_v3, %v1497_v7 }
0x1b16   :  { %v1500_v14 = vsel %vm523_vm8, %v1499_v22, %v1397_v9 }
0x1b17   :  { %1504 = vrot.lane.b32.xlu0 %v1500_v14, %s2761_s4 }
0x1b89   :  { %v1505_v23 = vpop.permute.xlu0 %1504 }
0x1b8a   :  { %2445 = vmatmul.mubr.msk.f32.vlgmr.msra.gmra.mrb[14].mxu1 %vm204_vm4, %v1505_v23 }
0x1b8b   :  { %2594 = vmatpush3.bf16.msra.mxu1 %v3102_v32  ;;  %2466 = vmatprep.mubr.msk.f32.mxu1 %vm2757_vm1, %v2758_v4 }
0x1b8c   :  { %2595 = vmatprep.subr.bf16.mxu1 %v2756_v0 }
0x1b8f   :  { %2597 = vmatpush3.bf16.msra.mxu1 %v3112_v37 }
0x1b90   :  { %2604 = vmatprep.subr.bf16.mxu1 %v2756_v0 }
0x1c5d   :  { %v1574_v13 = vpop.f32.mrb[14].mxu1 }
0x1c5e   :  { %v1578_v25 = vadd.f32 %v1574_v13, %v1167_v62  ;;  %v2446_v26 = vpop.f32.mrb[15].mxu1 }
0x1c60   :  { %2712 = vtanh.f32 %v1578_v25  ;;  %v2160_v30 = vmul.f32 -1.442695, %v1578_v25 }
0x1c62   :  { %2714 = vpow2.f32 %v2160_v30 }
0x1c6a   :  { %v2713_v29 = vpop.eup %2712 }
0x1c6b   :  { %1588 = vrot.lane.b32.xlu1 %v2713_v29, %s2760_s0 }
0x1c6c   :  { %v2715_v31 = vpop.eup %2714 }
0x1c6d   :  { %v1582_v35 = vadd.f32 1.0, %v2715_v31 }
0x1c6f   :  { %2716 = vrcp.f32 %v1582_v35 }
0x1c79   :  { %v2717_v36 = vpop.eup %2716 }
0x1c7a   :  { %v1586_v41 = vmul.f32 %v2717_v36, %v1501_v15 }
0x1cdd   :  { %v1589_v8 = vpop.permute.xlu1 %1588 }
0x1cde   :  { %v1591_v5 = vmul.f32 %v2717_v36, %v1589_v8 }
0x1ce0   :  { %1593 = vrot.lane.b32.xlu0 %v1591_v5, %s2760_s0 }
0x1d52   :  { %v1594_v42 = vpop.permute.xlu0 %1593 }
0x1d53   :  { %v1596_v43 = vadd.f32 %v1594_v42, %v1586_v41 }
0x1d55   :  { %2718 = vtanh.f32 %v1596_v43  ;;  %v1604_v18 = vsel %vm631_vm10, %v1596_v43, %v1501_v15 }
0x1d5f   :  { %v2719_v44 = vpop.eup %2718 }
0x1d60   :  { %1599 = vrot.lane.b32.xlu1 %v2719_v44, %s2760_s0 }
0x1dd2   :  { %v1600_v6 = vpop.permute.xlu1 %1599 }
0x1dd3   :  { %v1602_v45 = vmul.f32 %v2717_v36, %v1600_v6 }
0x1dd5   :  { %v1603_v47 = vsel %vm631_vm10, %v1602_v45, %v1500_v14 }
0x1dd6   :  { %1607 = vrot.lane.b32.xlu0 %v1603_v47, %s2761_s4 }
0x1e48   :  { %v1608_v48 = vpop.permute.xlu0 %1607 }
0x1e49   :  { %2456 = vmatmul.mubr.msk.f32.vlgmr.msra.gmra.mrb[24].mxu0 %vm204_vm4, %v1608_v48 }
0x1e4a   :  { %2600 = vmatpush3.bf16.msra.mxu0 %v3102_v32  ;;  %2477 = vmatprep.mubr.msk.f32.mxu0 %vm2757_vm1, %v2758_v4 }
0x1e4b   :  { %2601 = vmatprep.subr.bf16.mxu0 %v2756_v0 }
0x1e4e   :  { %2603 = vmatpush3.bf16.msra.mxu0 %v3112_v37 }
0x1e4f   :  { %2610 = vmatprep.subr.bf16.mxu0 %v2756_v0 }
0x1f1c   :  { %v1677_v28 = vpop.f32.mrb[24].mxu0 }
0x1f1d   :  { %v1681_v49 = vadd.f32 %v1677_v28, %v1172_v33  ;;  %v2457_v50 = vpop.f32.mrb[25].mxu0 }
0x1f1f   :  { %2720 = vtanh.f32 %v1681_v49  ;;  %v2162_v34 = vmul.f32 -1.442695, %v1681_v49 }
0x1f21   :  { %2722 = vpow2.f32 %v2162_v34 }
0x1f29   :  { %v2721_v51 = vpop.eup %2720 }
0x1f2a   :  { %1691 = vrot.lane.b32.xlu1 %v2721_v51, %s2760_s0 }
0x1f2b   :  { %v2723_v52 = vpop.eup %2722 }
0x1f2c   :  { %v1685_v16 = vadd.f32 1.0, %v2723_v52 }
0x1f2e   :  { %2724 = vrcp.f32 %v1685_v16 }
0x1f38   :  { %v2725_v9 = vpop.eup %2724 }
0x1f39   :  { %v1689_v58 = vmul.f32 %v2725_v9, %v1604_v18 }
0x1f9c   :  { %v1692_v54 = vpop.permute.xlu1 %1691 }
0x1f9d   :  { %v1694_v56 = vmul.f32 %v2725_v9, %v1692_v54 }
0x1f9f   :  { %1696 = vrot.lane.b32.xlu0 %v1694_v56, %s2760_s0 }
0x2011   :  { %v1697_v59 = vpop.permute.xlu0 %1696 }
0x2012   :  { %v1699_v60 = vadd.f32 %v1697_v59, %v1689_v58 }
0x2014   :  { %2726 = vtanh.f32 %v1699_v60  ;;  %v1707_v10 = vsel %vm739_vm12, %v1699_v60, %v1604_v18  ;;  %v2016_v60 = vld [vmem:[%s3317_s8] sm:$0xff] }
0x201e   :  { %v2727_v63 = vpop.eup %2726 }
0x201f   :  { %1702 = vrot.lane.b32.xlu1 %v2727_v63, %s2760_s0  ;;  %v2017_v63 = vld [vmem:[%s3317_s8 + $0x8] sm:$0xff] }
0x2091   :  { %v1703_v38 = vpop.permute.xlu1 %1702 }
0x2092   :  { %v1705_v1 = vmul.f32 %v2725_v9, %v1703_v38  ;;  %v2018_v38 = vld [vmem:[%s3317_s8 + $0x10] sm:$0xff] }
0x2094   :  { %v1706_v2 = vsel %vm739_vm12, %v1705_v1, %v1603_v47  ;;  %v2611_v1 = vpack.c.bf16 %v2017_v63, %v2016_v60 }
0x2095   :  { %1710 = vrot.lane.b32.xlu0 %v1706_v2, %s2761_s4 }
0x2107   :  { %v1711_v3 = vpop.permute.xlu0 %1710 }
0x2108   :  { %2467 = vmatmul.mubr.msk.f32.vlgmr.msra.gmra.mrb[16].mxu1 %vm204_vm4, %v1711_v3 }
0x2109   :  { %2606 = vmatpush3.bf16.msra.mxu1 %v3102_v32  ;;  %2488 = vmatprep.mubr.msk.f32.mxu1 %vm2757_vm1, %v2758_v4 }
0x210a   :  { %2607 = vmatprep.subr.bf16.mxu1 %v2756_v0 }
0x210d   :  { %2609 = vmatpush3.bf16.msra.mxu1 %v3112_v37 }
0x21db   :  { %v1780_v11 = vpop.f32.mrb[16].mxu1 }
0x21dc   :  { %v1784_v39 = vadd.f32 %v1780_v11, %v1177_v57  ;;  %v2468_v61 = vpop.f32.mrb[17].mxu1 }
0x21de   :  { %2728 = vtanh.f32 %v1784_v39  ;;  %v2164_v19 = vmul.f32 -1.442695, %v1784_v39 }
0x21e0   :  { %2730 = vpow2.f32 %v2164_v19 }
0x21e8   :  { %v2729_v17 = vpop.eup %2728 }
0x21e9   :  { %1794 = vrot.lane.b32.xlu1 %v2729_v17, %s2760_s0  ;;  %v2169_v17 = vld [vmem:[%s3318_s9] ss:$0 sm:$0xff] }
0x21ea   :  { %v2731_v32 = vpop.eup %2730 }
0x21eb   :  { %v1788_v20 = vadd.f32 1.0, %v2731_v32 }
0x21ed   :  { %2732 = vrcp.f32 %v1788_v20 }
0x21f7   :  { %v2733_v21 = vpop.eup %2732 }
0x21f8   :  { %v1792_v37 = vmul.f32 %v2733_v21, %v1707_v10 }
0x225b   :  { %v1795_v7 = vpop.permute.xlu1 %1794 }
0x225c   :  { %v1797_v22 = vmul.f32 %v2733_v21, %v1795_v7 }
0x225e   :  { %1799 = vrot.lane.b32.xlu0 %v1797_v22, %s2760_s0 }
0x22d0   :  { %v1800_v14 = vpop.permute.xlu0 %1799 }
0x22d1   :  { %v1802_v23 = vadd.f32 %v1800_v14, %v1792_v37 }
0x22d3   :  { %2734 = vtanh.f32 %v1802_v23 }
0x22dd   :  { %v2735_v62 = vpop.eup %2734 }
0x22de   :  { %1805 = vrot.lane.b32.xlu1 %v2735_v62, %s2760_s0 }
0x2350   :  { %v1806_v13 = vpop.permute.xlu1 %1805 }
0x2351   :  { %v1808_v25 = vmul.f32 %v2733_v21, %v1806_v13 }
0x2353   :  { %v1809_v26 = vsel %vm847_vm14, %v1808_v25, %v1706_v2  ;;  %v2614_v2 = vpack.c.bf16 %v2019_v40, %v2018_v38 }
0x2354   :  { %1813 = vrot.lane.b32.xlu0 %v1809_v26, %s2761_s4 }
0x23c6   :  { %v1814_v29 = vpop.permute.xlu0 %1813 }
0x23c7   :  { %2478 = vmatmul.mubr.msk.f32.vlgmr.msra.gmra.mrb[26].mxu0 %vm204_vm4, %v1814_v29 }
0x23c8   :  { %2499 = vmatprep.mubr.msk.f32.mxu0 %vm2757_vm1, %v2758_v4  ;;  %v1810_v4 = vsel %vm847_vm14, %v1802_v23, %v1707_v10  ;;  %2612 = vmatpush3.bf16.msra.mxu0 %v2611_v1  ;;  %vm2114_vm1 = vcmask 302080  }
0x23c9   :  { %2613 = vmatprep.subr.bf16.mxu0 %v2756_v0 }
0x23cc   :  { %2615 = vmatpush3.bf16.msra.mxu0 %v2614_v2 }
0x249a   :  { %v1883_v30 = vpop.f32.mrb[26].mxu0 }
0x249b   :  { %v1887_v31 = vadd.f32 %v1883_v30, %v1182_v27  ;;  %v2479_v35 = vpop.f32.mrb[27].mxu0 }
0x249d   :  { %2736 = vtanh.f32 %v1887_v31  ;;  %v2166_v8 = vmul.f32 -1.442695, %v1887_v31 }
0x249f   :  { %2738 = vpow2.f32 %v2166_v8 }
0x24a7   :  { %v2737_v36 = vpop.eup %2736 }
0x24a8   :  { %1897 = vrot.lane.b32.xlu1 %v2737_v36, %s2760_s0 }
0x24a9   :  { %v2739_v5 = vpop.eup %2738 }
0x24aa   :  { %v1891_v15 = vadd.f32 1.0, %v2739_v5 }
0x24ac   :  { %2740 = vrcp.f32 %v1891_v15 }
0x24b6   :  { %v2741_v41 = vpop.eup %2740 }
0x24b7   :  { %v1895_v55 = vmul.f32 %v2741_v41, %v1810_v4 }
0x251a   :  { %v1898_v42 = vpop.permute.xlu1 %1897 }
0x251b   :  { %v1900_v43 = vmul.f32 %v2741_v41, %v1898_v42 }
0x251d   :  { %1902 = vrot.lane.b32.xlu0 %v1900_v43, %s2760_s0 }
0x258f   :  { %v1903_v44 = vpop.permute.xlu0 %1902 }
0x2590   :  { %v1905_v6 = vadd.f32 %v1903_v44, %v1895_v55 }
0x2592   :  { %2742 = vtanh.f32 %v1905_v6  ;;  %v1913_v46 = vsel %vm955_vm0, %v1905_v6, %v1810_v4 }
0x259c   :  { %v2743_v45 = vpop.eup %2742 }
0x259d   :  { %1908 = vrot.lane.b32.xlu1 %v2743_v45, %s2760_s0 }
0x260f   :  { %v1909_v47 = vpop.permute.xlu1 %1908 }
0x2610   :  { %v1911_v48 = vmul.f32 %v2741_v41, %v1909_v47 }
0x2612   :  { %v1912_v33 = vsel %vm955_vm0, %v1911_v48, %v1809_v26 }
0x2613   :  { %1916 = vrot.lane.b32.xlu0 %v1912_v33, %s2761_s4 }
0x2685   :  { %v1917_v28 = vpop.permute.xlu0 %1916 }
0x2686   :  { %2489 = vmatmul.mubr.msk.f32.vlgmr.msra.gmra.mrb[18].mxu1 %vm204_vm4, %v1917_v28 }
0x2759   :  { %v1986_v49 = vpop.f32.mrb[18].mxu1 }
0x275a   :  { %v1990_v50 = vadd.f32 %v1986_v49, %v1187_v53  ;;  %v2490_v51 = vpop.f32.mrb[19].mxu1 }
0x275c   :  { %2744 = vtanh.f32 %v1990_v50  ;;  %v2168_v52 = vmul.f32 -1.442695, %v1990_v50 }
0x275e   :  { %2746 = vpow2.f32 %v2168_v52 }
0x2766   :  { %v2745_v34 = vpop.eup %2744 }
0x2767   :  { %2000 = vrot.lane.b32.xlu1 %v2745_v34, %s2760_s0 }
0x2768   :  { %v2747_v16 = vpop.eup %2746 }
0x2769   :  { %v1994_v9 = vadd.f32 1.0, %v2747_v16 }
0x276b   :  { %2748 = vrcp.f32 %v1994_v9 }
0x2775   :  { %v2749_v54 = vpop.eup %2748 }
0x2776   :  { %v1998_v12 = vmul.f32 %v2749_v54, %v1913_v46 }
0x27d9   :  { %v2001_v56 = vpop.permute.xlu1 %2000 }
0x27da   :  { %v2003_v18 = vmul.f32 %v2749_v54, %v2001_v56 }
0x27dc   :  { %2005 = vrot.lane.b32.xlu0 %v2003_v18, %s2760_s0 }
0x284e   :  { %v2006_v58 = vpop.permute.xlu0 %2005 }
0x284f   :  { %v2008_v59 = vadd.f32 %v2006_v58, %v1998_v12 }
0x2851   :  { %2750 = vtanh.f32 %v2008_v59 }
0x285b   :  { %v2751_v3 = vpop.eup %2750 }
0x285c   :  { %2011 = vrot.lane.b32.xlu1 %v2751_v3, %s2760_s0 }
0x28ce   :  { %v2012_v57 = vpop.permute.xlu1 %2011 }
0x28cf   :  { %v2014_v11 = vmul.f32 %v2749_v54, %v2012_v57 }
0x28d1   :  { %v2015_v39 = vsel %vm1063_vm5, %v2014_v11, %v1912_v33 }
0x28d2   :  { %2028 = vrot.lane.b32.xlu0 %v2015_v39, %s2761_s4 }
0x2944   :  { %v2029_v61 = vpop.permute.xlu0 %2028 }
0x2945   :  { %2500 = vmatmul.mubr.msk.f32.vlgmr.msra.gmra.mrb[28].mxu0 %vm204_vm4, %v2029_v61 }
0x2a18   :  { %v2098_v19 = vpop.f32.mrb[28].mxu0 }
0x2a19   :  { %v2099_v0 = vadd.f32 %v2169_v17, %v2098_v19  ;;  %v2501_v32 = vpop.f32.mrb[29].mxu0 }
0x2a1b   :  { %v2171_v20 = vmul.f32 -1.442695, %v2099_v0 }
0x2a1d   :  { %2752 = vpow2.f32 %v2171_v20 }
0x2a27   :  { %v2753_v21 = vpop.eup %2752 }
0x2a28   :  { %v2105_v7 = vadd.f32 1.0, %v2753_v21 }
0x2a2a   :  { %2754 = vrcp.f32 %v2105_v7 }
0x2a34   :  { %v2755_v22 = vpop.eup %2754 }
0x2a35   :  { %2110 = vrot.lane.b32.xlu1 %v2755_v22, %s2760_s0 }
0x2aa7   :  { %v2111_v24 = vpop.permute.xlu1 %2110 }
0x2aa8   :  { %v2113_v10 = vsel %vm204_vm4, %v2029_v61, %v2111_v24 }
0x2aa9   :  { %v2115_v37 = vsel %vm2114_vm1, %v2113_v10, 0.0 }
0x2aaa   :  { %2116 = vst [vmem:[%s3319_s10] sm:$0xff] %v2115_v37 }

</bundles_post_ra>
